<compile_context>
chip_gen: v6e
topology: v6e:2x2x1
jax: 0.10.0
libtpu: 0.0.40
codegen_flags: <defaults>
</compile_context>

<pallas_src>
from functools import partial

import numpy as np
import jax
import jax.numpy as jnp
from jax.experimental import pallas as pl
from jax.experimental.pallas import tpu as pltpu


CPAD = 128          # conv output channels padded to one full 128-lane row
DPAD = 128          # fused heads (mu | logvar | pose) padded to 128 lanes
BN_EPS = 1e-5


def _vmem_limit_bytes():
    # v7x has 64 MiB VMEM per TensorCore, v5e/v6e have 128 MiB; budget 3/4 of
    # whatever the current chip reports (fallback = the v7x-safe 48 MiB).
    try:
        cap = int(pltpu.get_tpu_info().vmem_capacity_bytes)
    except Exception:
        cap = 64 * 1024 * 1024
    return (cap // 4) * 3


VMEM_LIMIT = _vmem_limit_bytes()


# ----------------------------------------------------------------------------
# Pallas kernels
# ----------------------------------------------------------------------------

def conv_bn_relu_kernel(xs_ref, mask_ref, scale_ref, shift_ref, w_ref, b_ref,
                        y_ref, s_ref, ss_ref):
    """One fully-fused Encoder layer for one batch item:

        z   = mask * (scale_prev * x + shift_prev)    # previous layer's BatchNorm
        y   = relu(conv_k3s2p1(z) + bias)             # this layer's conv (s2d form)
        out = y (bf16), per-channel sum(y), sum(y*y)  # stats for THIS layer's BN

    xs_ref    : (1, Mp, K4)       bf16  flattened s2d(+pad) previous pre-BN activation
    mask_ref  : (Mp, 1)           f32   1 at real pixels, 0 at conv zero-padding
    scale_ref : (1, K4)           f32   previous-layer BN scale (ones for the image)
    shift_ref : (1, K4)           f32   previous-layer BN shift (zeros for the image)
    w_ref     : (K4, 4*CPAD)      bf16  conv weight; output column block k = dy*2+dx
    b_ref     : (1, CPAD)         f32   conv bias (zero in padded lanes)
    y_ref     : (1, Ho, Wo, CPAD) bf16  pre-BN activation of this layer
    s_ref     : (1, 1, CPAD)      f32   per-channel sum of y for this batch item
    ss_ref    : (1, 1, CPAD)      f32   per-channel sum of y*y
    """
    ho, wo = y_ref.shape[1], y_ref.shape[2]
    mp = xs_ref.shape[1]
    hp = ho + 1
    wp_pad = mp // hp

    x = xs_ref[0].astype(jnp.float32)                               # (Mp, K4)
    z = (x * scale_ref[...] + shift_ref[...]) * mask_ref[...]       # prev BN + padding
    acc = jnp.dot(z.astype(jnp.bfloat16), w_ref[...],
                  preferred_element_type=jnp.float32)               # (Mp, 4*CPAD)
    acc = acc.reshape(hp, wp_pad, 4 * CPAD)                         # wp_pad % 8 == 0
    y = (acc[:ho, :wo, 0 * CPAD:1 * CPAD]            # (dy, dx) = (0, 0)
         + acc[:ho, 1:wo + 1, 1 * CPAD:2 * CPAD]     # (0, 1)
         + acc[1:, :wo, 2 * CPAD:3 * CPAD]           # (1, 0)
         + acc[1:, 1:wo + 1, 3 * CPAD:4 * CPAD]      # (1, 1)
         + b_ref[...])
    y = jnp.maximum(y, 0.0)                          # ReLU before BN, as in the module
    y_ref[0] = y.astype(jnp.bfloat16)
    s_ref[...] = jnp.sum(y, axis=(0, 1), keepdims=True)
    ss_ref[...] = jnp.sum(y * y, axis=(0, 1), keepdims=True)


def heads_kernel(x_ref, scale_ref, shift_ref, w_ref, b_ref, o_ref):
    """Fused fc_mu | fc_logvar | fc_pose with the last layer's BatchNorm folded in."""
    z = x_ref[...].astype(jnp.float32) * scale_ref[...] + shift_ref[...]
    o_ref[...] = (jnp.dot(z.astype(jnp.bfloat16), w_ref[...],
                          preferred_element_type=jnp.float32) + b_ref[...])


# ----------------------------------------------------------------------------
# Layer wrappers (JAX-side glue does only size-preserving layout transforms)
# ----------------------------------------------------------------------------

def conv_bn_relu_pass(x_pre, scale_prev, shift_prev, w_s2d, bias):
    """Conv2d(k3,s2,p1) + bias + ReLU applied to BN(scale_prev, shift_prev)(x_pre).

    x_pre : (N, H, W, Cin) bf16 -- previous layer's pre-BN activation (or the image).
    Returns (y, sum, sumsq): y is (N, Ho, Wo, CPAD) bf16 pre-BN activation.
    """
    n, h, wdt, cin = x_pre.shape
    assert h % 2 == 0 and wdt % 2 == 0, "k=3/s=2/p=1 lowering assumes even H, W"
    ho, wo = h // 2, wdt // 2
    hp, wp = ho + 1, wo + 1
    wp_pad = ((wp + 7) // 8) * 8        # sublane-aligned so the in-kernel reshape is free
    mp = hp * wp_pad
    k4 = 4 * cin

    # Space-to-depth (channel order (ry, rx, c)) + one zero block row/col for
    # the conv's padding + right-pad to a sublane multiple, then flatten.
    xs = x_pre.reshape(n, ho, 2, wo, 2, cin).transpose(0, 1, 3, 2, 4, 5)
    xs = xs.reshape(n, ho, wo, k4)
    xs = jnp.pad(xs, ((0, 0), (1, 0), (1, 0), (0, 0)))
    xs = jnp.pad(xs, ((0, 0), (0, 0), (0, wp_pad - wp), (0, 0)))
    xs_flat = xs.reshape(n, mp, k4)

    mask_np = np.zeros((hp, wp_pad, 1), np.float32)
    mask_np[1:, 1:wp, 0] = 1.0
    mask = jnp.asarray(mask_np.reshape(mp, 1))

    scale4 = jnp.tile(scale_prev, 4).reshape(1, k4)   # s2d channel order repeats c 4x
    shift4 = jnp.tile(shift_prev, 4).reshape(1, k4)

    flops = int(2 * n * mp * k4 * 4 * CPAD)
    bytes_acc = int(xs_flat.size * 2 + mask.size * 4 + 2 * k4 * 4
                    + w_s2d.size * 2 + bias.size * 4
                    + n * ho * wo * CPAD * 2 + 2 * n * CPAD * 4)

    return pl.pallas_call(
        conv_bn_relu_kernel,
        out_shape=(jax.ShapeDtypeStruct((n, ho, wo, CPAD), jnp.bfloat16),
                   jax.ShapeDtypeStruct((n, 1, CPAD), jnp.float32),
                   jax.ShapeDtypeStruct((n, 1, CPAD), jnp.float32)),
        grid=(n,),
        in_specs=[
            pl.BlockSpec((1, mp, k4), lambda i: (i, 0, 0)),        # s2d input (once)
            pl.BlockSpec((mp, 1), lambda i: (0, 0)),               # padding mask (resident)
            pl.BlockSpec((1, k4), lambda i: (0, 0)),               # prev BN scale
            pl.BlockSpec((1, k4), lambda i: (0, 0)),               # prev BN shift
            pl.BlockSpec((k4, 4 * CPAD), lambda i: (0, 0)),        # conv weight (resident)
            pl.BlockSpec((1, CPAD), lambda i: (0, 0)),             # conv bias
        ],
        out_specs=(
            pl.BlockSpec((1, ho, wo, CPAD), lambda i: (i, 0, 0, 0)),
            pl.BlockSpec((1, 1, CPAD), lambda i: (i, 0, 0)),
            pl.BlockSpec((1, 1, CPAD), lambda i: (i, 0, 0)),
        ),
        compiler_params=pltpu.CompilerParams(
            dimension_semantics=("parallel",),     # N>=2 steps -> both v7x TCs get work
            vmem_limit_bytes=VMEM_LIMIT),
        cost_estimate=pl.CostEstimate(flops=flops, transcendentals=0,
                                      bytes_accessed=bytes_acc),
    )(xs_flat, mask, scale4, shift4, w_s2d, bias)


def fc_heads(x_flat, scale_rows, shift_rows, w_heads, b_heads):
    """Fused heads matmul with the final BatchNorm affine applied in-kernel."""
    n, f_pad = x_flat.shape
    dpad = w_heads.shape[1]
    return pl.pallas_call(
        heads_kernel,
        out_shape=jax.ShapeDtypeStruct((n, dpad), jnp.float32),
        grid=(1,),
        in_specs=[pl.BlockSpec((n, f_pad), lambda i: (0, 0)),
                  pl.BlockSpec((1, f_pad), lambda i: (0, 0)),
                  pl.BlockSpec((1, f_pad), lambda i: (0, 0)),
                  pl.BlockSpec((f_pad, dpad), lambda i: (0, 0)),
                  pl.BlockSpec((1, dpad), lambda i: (0, 0))],
        out_specs=pl.BlockSpec((n, dpad), lambda i: (0, 0)),
        compiler_params=pltpu.CompilerParams(
            dimension_semantics=("arbitrary",),
            vmem_limit_bytes=VMEM_LIMIT),
        cost_estimate=pl.CostEstimate(
            flops=int(2 * n * f_pad * dpad), transcendentals=0,
            bytes_accessed=int(x_flat.size * 2 + 2 * f_pad * 4
                               + w_heads.size * 2 + b_heads.size * 4
                               + n * dpad * 4)),
    )(x_flat, scale_rows, shift_rows, w_heads, b_heads)


@partial(jax.jit, static_argnames=("capacity", "depth", "latent_dims", "pose_dims"))
def encoder_forward(x_nchw, params, *, capacity, depth, latent_dims, pose_dims):
    assert depth >= 1, "Pallas path implemented for depth >= 1 (test uses depth=2)"
    n = x_nchw.shape[0]
    # NCHW (PyTorch) -> NHWC; bf16 MXU operands, f32 accumulation in-kernel.
    x = jnp.transpose(x_nchw, (0, 2, 3, 1)).astype(jnp.bfloat16)
    cin = x.shape[-1]
    scale = jnp.ones((cin,), jnp.float32)        # identity "BN" for the raw image
    shift = jnp.zeros((cin,), jnp.float32)
    for d in range(depth):
        cout = capacity * (d + 1)
        layer = params["convs"][d]
        y, psum, psumsq = conv_bn_relu_pass(
            x[..., :cin], scale[:cin], shift[:cin], layer["w"], layer["bias"])
        # BatchNorm batch stats from the per-item partial sums (tiny JAX reduce).
        # The resulting per-channel affine is applied by the NEXT consumer
        # in-kernel, so the standalone BN pass over the activation disappears.
        # NOTE: f32 E[x^2]-E[x]^2; fine at these sizes (clamped), Welford if m huge.
        m = y.shape[0] * y.shape[1] * y.shape[2]
        mean = jnp.sum(psum, axis=(0, 1)) / m
        var = jnp.maximum(jnp.sum(psumsq, axis=(0, 1)) / m - mean * mean, 0.0)
        rstd = jax.lax.rsqrt(var + BN_EPS)
        scale = layer["gamma"] * rstd                     # (CPAD,), zero in padded lanes
        shift = layer["beta"] - mean * scale
        x, cin = y, cout

    # Heads: the last layer's BN is folded into the fused mu|logvar|pose matmul.
    # The flatten keeps the CPAD lane padding (padded channels have zero
    # scale/shift and zero weight rows), so no un-padding / transpose is needed.
    ho, wo = x.shape[1], x.shape[2]
    f_pad = ho * wo * CPAD
    x_flat = x.reshape(n, f_pad)
    scale_rows = jnp.broadcast_to(scale, (ho * wo, CPAD)).reshape(1, f_pad)
    shift_rows = jnp.broadcast_to(shift, (ho * wo, CPAD)).reshape(1, f_pad)
    heads = fc_heads(x_flat, scale_rows, shift_rows,
                     params["w_heads"], params["b_heads"])
    x_mu = heads[:, :latent_dims]
    x_logvar = heads[:, latent_dims:2 * latent_dims]
    if pose_dims > 0:
        x_pose = heads[:, 2 * latent_dims:2 * latent_dims + pose_dims]
        return x_mu, x_logvar, x_pose
    return x_mu, x_logvar


# ----------------------------------------------------------------------------
# Parameters (match Encoder.__init__ shapes) + pure-JAX reference
# ----------------------------------------------------------------------------

def conv3x3_to_s2d_weight(w3, cpad):
    """(3,3,Cin,Cout) HWIO conv weight -> (4*Cin, 4*cpad) bf16 weight for the
    space-to-depth 2x2-conv form of a k=3/s=2/p=1 conv.  Rows are ordered
    (ry, rx, cin) to match the s2d channel order; output column block k holds
    the weights applied at s2d offset (dy, dx) = (k // 2, k % 2)."""
    w3 = np.asarray(w3, np.float32)
    cin, cout = w3.shape[2], w3.shape[3]
    w2 = np.zeros((2, 2, 2, 2, cin, cpad), np.float32)   # (dy, dx, ry, rx, cin, cpad)
    for dy in range(2):
        for dx in range(2):
            for ry in range(2):
                for rx in range(2):
                    ky, kx = 2 * dy + ry - 1, 2 * dx + rx - 1
                    if 0 <= ky < 3 and 0 <= kx < 3:
                        w2[dy, dx, ry, rx, :, :cout] = w3[ky, kx]
    w = w2.transpose(2, 3, 4, 0, 1, 5).reshape(4 * cin, 4 * cpad)
    return jnp.asarray(w, dtype=jnp.bfloat16)


def make_params(capacity, depth, bottom_dim, latent_dims, pose_dims, key):
    c = capacity
    kparams = {"convs": []}
    rparams = {"convs": []}
    prev_sh = 1
    for d in range(depth):
        sh = c * (d + 1)
        key, k1, k2, k3, k4 = jax.random.split(key, 5)
        w3 = 0.1 * jax.random.normal(k1, (3, 3, prev_sh, sh), dtype=jnp.float32)   # HWIO
        b = 0.05 * jax.random.normal(k2, (sh,), dtype=jnp.float32)
        gamma = 1.0 + 0.1 * jax.random.normal(k3, (sh,), dtype=jnp.float32)
        beta = 0.1 * jax.random.normal(k4, (sh,), dtype=jnp.float32)
        rparams["convs"].append((w3, b, gamma, beta))
        kparams["convs"].append(dict(
            w=conv3x3_to_s2d_weight(np.asarray(w3), CPAD),
            bias=jnp.zeros((1, CPAD), jnp.float32).at[0, :sh].set(b),
            # gamma/beta MUST stay exactly zero in padded lanes (var=0 there).
            gamma=jnp.zeros((CPAD,), jnp.float32).at[:sh].set(gamma),
            beta=jnp.zeros((CPAD,), jnp.float32).at[:sh].set(beta),
        ))
        prev_sh = sh

    chf = 1 if depth == 0 else c * depth
    hb, wb = bottom_dim
    feat = chf * hb * wb
    key, k1, k2, k3, k4, k5, k6 = jax.random.split(key, 7)
    # PyTorch-style Linear weights: (out, F) with F in NCHW (C, H, W) flatten order.
    wmu_pt = 0.05 * jax.random.normal(k1, (latent_dims, feat), dtype=jnp.float32)
    wlv_pt = 0.05 * jax.random.normal(k3, (latent_dims, feat), dtype=jnp.float32)
    wp_pt = 0.05 * jax.random.normal(k5, (pose_dims, feat), dtype=jnp.float32)
    bmu = 0.01 * jax.random.normal(k2, (latent_dims,), dtype=jnp.float32)
    blv = 0.01 * jax.random.normal(k4, (latent_dims,), dtype=jnp.float32)
    bp = 0.01 * jax.random.normal(k6, (pose_dims,), dtype=jnp.float32)

    # Reference params: one-time row permutation (C,H,W) -> (H,W,C) so the
    # reference consumes the NHWC feature map directly.
    perm = np.arange(feat).reshape(chf, hb, wb).transpose(1, 2, 0).reshape(-1)
    rparams.update(wmu=jnp.asarray(np.asarray(wmu_pt).T[perm]), bmu=bmu,
                   wlv=jnp.asarray(np.asarray(wlv_pt).T[perm]), blv=blv,
                   wp=jnp.asarray(np.asarray(wp_pt).T[perm]), bp=bp)

    # Kernel heads: one fused (Ho*Wo*CPAD, 128) bf16 weight whose rows already
    # account for the CPAD-lane (padded-channel) NHWC flatten of the last conv
    # layer -- padded-channel rows are zero, so no un-padding before the heads.
    w_all = np.zeros((hb, wb, CPAD, DPAD), np.float32)

    def place(w_pt, col0):
        out = w_pt.shape[0]
        if out == 0:
            return
        wr = np.asarray(w_pt, np.float32).reshape(out, chf, hb, wb).transpose(2, 3, 1, 0)
        w_all[:, :, :chf, col0:col0 + out] = wr

    place(np.asarray(wmu_pt), 0)
    place(np.asarray(wlv_pt), latent_dims)
    place(np.asarray(wp_pt), 2 * latent_dims)
    b_all = np.zeros((1, DPAD), np.float32)
    b_all[0, :latent_dims] = np.asarray(bmu)
    b_all[0, latent_dims:2 * latent_dims] = np.asarray(blv)
    if pose_dims > 0:
        b_all[0, 2 * latent_dims:2 * latent_dims + pose_dims] = np.asarray(bp)
    kparams["w_heads"] = jnp.asarray(w_all.reshape(hb * wb * CPAD, DPAD), jnp.bfloat16)
    kparams["b_heads"] = jnp.asarray(b_all)
    return kparams, rparams


@jax.jit
def encoder_reference(x_nchw, ref_params):
    """Pure-JAX f32 reference of the Encoder forward (for validation)."""
    x = jnp.transpose(x_nchw, (0, 2, 3, 1)).astype(jnp.float32)
    for (w3, b, gamma, beta) in ref_params["convs"]:
        y = jax.lax.conv_general_dilated(
            x, w3, window_strides=(2, 2), padding=((1, 1), (1, 1)),
            dimension_numbers=("NHWC", "HWIO", "NHWC"))
        y = jnp.maximum(y + b, 0.0)
        mean = jnp.mean(y, axis=(0, 1, 2), keepdims=True)
        var = jnp.mean((y - mean) ** 2, axis=(0, 1, 2), keepdims=True)
        x = gamma * (y - mean) * jax.lax.rsqrt(var + BN_EPS) + beta
    n = x.shape[0]
    xf = x.reshape(n, -1)          # NHWC flatten (head weights pre-permuted to match)
    mu = xf @ ref_params["wmu"] + ref_params["bmu"]
    lv = xf @ ref_params["wlv"] + ref_params["blv"]
    pose = xf @ ref_params["wp"] + ref_params["bp"]
    return mu, lv, pose


# ----------------------------------------------------------------------------

if __name__ == "__main__":
    capacity, depth = 4, 2
    H = W = 16
    bottom_dim = (H // 2 ** depth, W // 2 ** depth)   # (4, 4)
    latent_dims, pose_dims = 8, 3
    N = 2

    key = jax.random.PRNGKey(0)
    key, kx = jax.random.split(key)
    # Encoder's first conv has in_channels = 1, so input is (N, 1, H, W).
    x = jax.random.normal(kx, (N, 1, H, W), dtype=jnp.float32)

    params, ref_params = make_params(capacity, depth, bottom_dim,
                                     latent_dims, pose_dims, key)

    outs = encoder_forward(x, params, capacity=capacity, depth=depth,
                           latent_dims=latent_dims, pose_dims=pose_dims)
    outs = jax.block_until_ready(outs)
    x_mu, x_logvar, x_pose = outs

    r_mu, r_lv, r_pose = jax.block_until_ready(encoder_reference(x, ref_params))

    assert x_mu.shape == (N, latent_dims)
    assert x_logvar.shape == (N, latent_dims)
    assert x_pose.shape == (N, pose_dims)
    for got, want in ((x_mu, r_mu), (x_logvar, r_lv), (x_pose, r_pose)):
        got = np.asarray(got, np.float32)
        want = np.asarray(want, np.float32)
        assert np.all(np.isfinite(got))
        # Loose tolerance: kernel uses bf16 MXU operands and bf16 intermediates
        # (f32 accumulation and f32 BN math).
        assert np.allclose(got, want, rtol=1e-1, atol=1e-1), \
            float(np.abs(got - want).max())

    print("KERNEL_OK")
</pallas_src>

<mosaic_0001>
module attributes {stable_mosaic.version = 11 : i64} {
  func.func @conv_bn_relu_kernel(%arg0: i32, %arg1: memref<1x144x4xbf16, #tpu.memory_space<vmem>>, %arg2: memref<144x1xf32, #tpu.memory_space<vmem>>, %arg3: memref<1x4xf32, #tpu.memory_space<vmem>>, %arg4: memref<1x4xf32, #tpu.memory_space<vmem>>, %arg5: memref<4x512xbf16, #tpu.memory_space<vmem>>, %arg6: memref<1x128xf32, #tpu.memory_space<vmem>>, %arg7: memref<1x8x8x128xbf16, #tpu.memory_space<vmem>>, %arg8: memref<1x1x128xf32, #tpu.memory_space<vmem>>, %arg9: memref<1x1x128xf32, #tpu.memory_space<vmem>>) attributes {dimension_semantics = [#tpu.dimension_semantics<parallel>], iteration_bounds = array<i64: 2>, scalar_prefetch = 0 : i64, scratch_operands = 0 : i64, tpu.core_type = #tpu.core_type<tc>, window_params = [{transform_indices = @transform_0, window_bounds = array<i64: 1, 144, 4>}, {pipeline_mode = #tpu.pipeline_mode<synchronous>, transform_indices = @transform_1, window_bounds = array<i64: 144, 1>}, {pipeline_mode = #tpu.pipeline_mode<synchronous>, transform_indices = @transform_2, window_bounds = array<i64: 1, 4>}, {pipeline_mode = #tpu.pipeline_mode<synchronous>, transform_indices = @transform_3, window_bounds = array<i64: 1, 4>}, {pipeline_mode = #tpu.pipeline_mode<synchronous>, transform_indices = @transform_4, window_bounds = array<i64: 4, 512>}, {pipeline_mode = #tpu.pipeline_mode<synchronous>, transform_indices = @transform_5, window_bounds = array<i64: 1, 128>}, {transform_indices = @transform_6, window_bounds = array<i64: 1, 8, 8, 128>}, {transform_indices = @transform_7, window_bounds = array<i64: 1, 1, 128>}, {transform_indices = @transform_8, window_bounds = array<i64: 1, 1, 128>}]} {
    %c0 = arith.constant 0 : index
    %c0_0 = arith.constant 0 : index
    %c0_1 = arith.constant 0 : index
    %0 = vector.load %arg1[%c0, %c0_0, %c0_1] : memref<1x144x4xbf16, #tpu.memory_space<vmem>>, vector<1x144x4xbf16>
    %1 = vector.shape_cast %0 : vector<1x144x4xbf16> to vector<144x4xbf16>
    %2 = arith.extf %1 : vector<144x4xbf16> to vector<144x4xf32>
    %c0_2 = arith.constant 0 : index
    %c0_3 = arith.constant 0 : index
    %3 = vector.load %arg3[%c0_2, %c0_3] : memref<1x4xf32, #tpu.memory_space<vmem>>, vector<1x4xf32>
    %4 = vector.broadcast %3 : vector<1x4xf32> to vector<144x4xf32>
    %5 = arith.mulf %2, %4 : vector<144x4xf32>
    %c0_4 = arith.constant 0 : index
    %c0_5 = arith.constant 0 : index
    %6 = vector.load %arg4[%c0_4, %c0_5] : memref<1x4xf32, #tpu.memory_space<vmem>>, vector<1x4xf32>
    %7 = vector.broadcast %6 : vector<1x4xf32> to vector<144x4xf32>
    %8 = arith.addf %5, %7 : vector<144x4xf32>
    %c0_6 = arith.constant 0 : index
    %c0_7 = arith.constant 0 : index
    %9 = vector.load %arg2[%c0_6, %c0_7] : memref<144x1xf32, #tpu.memory_space<vmem>>, vector<144x1xf32>
    %10 = vector.broadcast %9 : vector<144x1xf32> to vector<144x4xf32>
    %11 = arith.mulf %8, %10 : vector<144x4xf32>
    %12 = arith.truncf %11 : vector<144x4xf32> to vector<144x4xbf16>
    %c0_8 = arith.constant 0 : index
    %c0_9 = arith.constant 0 : index
    %13 = vector.load %arg5[%c0_8, %c0_9] : memref<4x512xbf16, #tpu.memory_space<vmem>>, vector<4x512xbf16>
    %cst = arith.constant dense<0.000000e+00> : vector<144x512xf32>
    %14 = tpu.matmul %12, %13, %cst {dimension_numbers = #tpu.dot_dimension_numbers<[1], [0], [0], [1], [0, 0, 1, 1], [], []>} : vector<144x4xbf16>, vector<4x512xbf16>, vector<144x512xf32> -> vector<144x512xf32>
    %15 = vector.shape_cast %14 : vector<144x512xf32> to vector<9x16x512xf32>
    %16 = vector.extract_strided_slice %15 {offsets = [0, 0, 0], sizes = [8, 8, 128], strides = [1, 1, 1]} : vector<9x16x512xf32> to vector<8x8x128xf32>
    %17 = vector.extract_strided_slice %15 {offsets = [0, 1, 128], sizes = [8, 8, 128], strides = [1, 1, 1]} : vector<9x16x512xf32> to vector<8x8x128xf32>
    %18 = arith.addf %16, %17 : vector<8x8x128xf32>
    %19 = vector.extract_strided_slice %15 {offsets = [1, 0, 256], sizes = [8, 8, 128], strides = [1, 1, 1]} : vector<9x16x512xf32> to vector<8x8x128xf32>
    %20 = arith.addf %18, %19 : vector<8x8x128xf32>
    %21 = vector.extract_strided_slice %15 {offsets = [1, 1, 384], sizes = [8, 8, 128], strides = [1, 1, 1]} : vector<9x16x512xf32> to vector<8x8x128xf32>
    %22 = arith.addf %20, %21 : vector<8x8x128xf32>
    %c0_10 = arith.constant 0 : index
    %c0_11 = arith.constant 0 : index
    %23 = vector.load %arg6[%c0_10, %c0_11] : memref<1x128xf32, #tpu.memory_space<vmem>>, vector<1x128xf32>
    %24 = vector.shape_cast %23 : vector<1x128xf32> to vector<1x1x128xf32>
    %25 = vector.broadcast %24 : vector<1x1x128xf32> to vector<8x8x128xf32>
    %26 = arith.addf %22, %25 : vector<8x8x128xf32>
    %cst_12 = arith.constant 0.000000e+00 : f32
    %27 = vector.broadcast %cst_12 : f32 to vector<8x8x128xf32>
    %28 = arith.maximumf %26, %27 : vector<8x8x128xf32>
    %29 = arith.truncf %28 : vector<8x8x128xf32> to vector<8x8x128xbf16>
    %c0_13 = arith.constant 0 : index
    %c0_14 = arith.constant 0 : index
    %c0_15 = arith.constant 0 : index
    %c0_16 = arith.constant 0 : index
    %30 = vector.load %arg7[%c0_13, %c0_14, %c0_15, %c0_16] : memref<1x8x8x128xbf16, #tpu.memory_space<vmem>>, vector<1x8x8x128xbf16>
    %31 = vector.shape_cast %30 : vector<1x8x8x128xbf16> to vector<8x8x128xbf16>
    %32 = vector.shape_cast %29 : vector<8x8x128xbf16> to vector<1x8x8x128xbf16>
    tpu.vector_store %arg7[%c0_13, %c0_14, %c0_15, %c0_16], %32 {strides = array<i32>} : memref<1x8x8x128xbf16, #tpu.memory_space<vmem>>, vector<1x8x8x128xbf16>,
    %cst_17 = arith.constant dense<0.000000e+00> : vector<128xf32>
    %33 = vector.multi_reduction <add>, %28, %cst_17 [0, 1] : vector<8x8x128xf32> to vector<128xf32>
    %34 = vector.shape_cast %33 : vector<128xf32> to vector<1x1x128xf32>
    %c0_18 = arith.constant 0 : index
    %c0_19 = arith.constant 0 : index
    %c0_20 = arith.constant 0 : index
    %35 = vector.load %arg8[%c0_18, %c0_19, %c0_20] : memref<1x1x128xf32, #tpu.memory_space<vmem>>, vector<1x1x128xf32>
    tpu.vector_store %arg8[%c0_18, %c0_19, %c0_20], %34 {strides = array<i32>} : memref<1x1x128xf32, #tpu.memory_space<vmem>>, vector<1x1x128xf32>,
    %36 = arith.mulf %28, %28 : vector<8x8x128xf32>
    %cst_21 = arith.constant dense<0.000000e+00> : vector<128xf32>
    %37 = vector.multi_reduction <add>, %36, %cst_21 [0, 1] : vector<8x8x128xf32> to vector<128xf32>
    %38 = vector.shape_cast %37 : vector<128xf32> to vector<1x1x128xf32>
    %c0_22 = arith.constant 0 : index
    %c0_23 = arith.constant 0 : index
    %c0_24 = arith.constant 0 : index
    %39 = vector.load %arg9[%c0_22, %c0_23, %c0_24] : memref<1x1x128xf32, #tpu.memory_space<vmem>>, vector<1x1x128xf32>
    tpu.vector_store %arg9[%c0_22, %c0_23, %c0_24], %38 {strides = array<i32>} : memref<1x1x128xf32, #tpu.memory_space<vmem>>, vector<1x1x128xf32>,
    return
  }
  func.func @transform_0(%arg0: i32) -> (i32, i32, i32) {
    %c0_i32 = arith.constant 0 : i32
    %c0_i32_0 = arith.constant 0 : i32
    %c0_i32_1 = arith.constant 0 : i32
    return %arg0, %c0_i32, %c0_i32_0 : i32, i32, i32
  }
  func.func @transform_1(%arg0: i32) -> (i32, i32) {
    %c0_i32 = arith.constant 0 : i32
    %c0_i32_0 = arith.constant 0 : i32
    %c0_i32_1 = arith.constant 0 : i32
    return %c0_i32, %c0_i32_0 : i32, i32
  }
  func.func @transform_2(%arg0: i32) -> (i32, i32) {
    %c0_i32 = arith.constant 0 : i32
    %c0_i32_0 = arith.constant 0 : i32
    %c0_i32_1 = arith.constant 0 : i32
    return %c0_i32, %c0_i32_0 : i32, i32
  }
  func.func @transform_3(%arg0: i32) -> (i32, i32) {
    %c0_i32 = arith.constant 0 : i32
    %c0_i32_0 = arith.constant 0 : i32
    %c0_i32_1 = arith.constant 0 : i32
    return %c0_i32, %c0_i32_0 : i32, i32
  }
  func.func @transform_4(%arg0: i32) -> (i32, i32) {
    %c0_i32 = arith.constant 0 : i32
    %c0_i32_0 = arith.constant 0 : i32
    %c0_i32_1 = arith.constant 0 : i32
    return %c0_i32, %c0_i32_0 : i32, i32
  }
  func.func @transform_5(%arg0: i32) -> (i32, i32) {
    %c0_i32 = arith.constant 0 : i32
    %c0_i32_0 = arith.constant 0 : i32
    %c0_i32_1 = arith.constant 0 : i32
    return %c0_i32, %c0_i32_0 : i32, i32
  }
  func.func @transform_6(%arg0: i32) -> (i32, i32, i32, i32) {
    %c0_i32 = arith.constant 0 : i32
    %c0_i32_0 = arith.constant 0 : i32
    %c0_i32_1 = arith.constant 0 : i32
    %c0_i32_2 = arith.constant 0 : i32
    return %arg0, %c0_i32, %c0_i32_0, %c0_i32_1 : i32, i32, i32, i32
  }
  func.func @transform_7(%arg0: i32) -> (i32, i32, i32) {
    %c0_i32 = arith.constant 0 : i32
    %c0_i32_0 = arith.constant 0 : i32
    %c0_i32_1 = arith.constant 0 : i32
    return %arg0, %c0_i32, %c0_i32_0 : i32, i32, i32
  }
  func.func @transform_8(%arg0: i32) -> (i32, i32, i32) {
    %c0_i32 = arith.constant 0 : i32
    %c0_i32_0 = arith.constant 0 : i32
    %c0_i32_1 = arith.constant 0 : i32
    return %arg0, %c0_i32, %c0_i32_0 : i32, i32, i32
  }
}

module attributes {stable_mosaic.version = 11 : i64} {
  func.func @conv_bn_relu_kernel(%arg0: i32, %arg1: memref<1x40x16xbf16, #tpu.memory_space<vmem>>, %arg2: memref<40x1xf32, #tpu.memory_space<vmem>>, %arg3: memref<1x16xf32, #tpu.memory_space<vmem>>, %arg4: memref<1x16xf32, #tpu.memory_space<vmem>>, %arg5: memref<16x512xbf16, #tpu.memory_space<vmem>>, %arg6: memref<1x128xf32, #tpu.memory_space<vmem>>, %arg7: memref<1x4x4x128xbf16, #tpu.memory_space<vmem>>, %arg8: memref<1x1x128xf32, #tpu.memory_space<vmem>>, %arg9: memref<1x1x128xf32, #tpu.memory_space<vmem>>) attributes {dimension_semantics = [#tpu.dimension_semantics<parallel>], iteration_bounds = array<i64: 2>, scalar_prefetch = 0 : i64, scratch_operands = 0 : i64, tpu.core_type = #tpu.core_type<tc>, window_params = [{transform_indices = @transform_0, window_bounds = array<i64: 1, 40, 16>}, {pipeline_mode = #tpu.pipeline_mode<synchronous>, transform_indices = @transform_1, window_bounds = array<i64: 40, 1>}, {pipeline_mode = #tpu.pipeline_mode<synchronous>, transform_indices = @transform_2, window_bounds = array<i64: 1, 16>}, {pipeline_mode = #tpu.pipeline_mode<synchronous>, transform_indices = @transform_3, window_bounds = array<i64: 1, 16>}, {pipeline_mode = #tpu.pipeline_mode<synchronous>, transform_indices = @transform_4, window_bounds = array<i64: 16, 512>}, {pipeline_mode = #tpu.pipeline_mode<synchronous>, transform_indices = @transform_5, window_bounds = array<i64: 1, 128>}, {transform_indices = @transform_6, window_bounds = array<i64: 1, 4, 4, 128>}, {transform_indices = @transform_7, window_bounds = array<i64: 1, 1, 128>}, {transform_indices = @transform_8, window_bounds = array<i64: 1, 1, 128>}]} {
    %c0 = arith.constant 0 : index
    %c0_0 = arith.constant 0 : index
    %c0_1 = arith.constant 0 : index
    %0 = vector.load %arg1[%c0, %c0_0, %c0_1] : memref<1x40x16xbf16, #tpu.memory_space<vmem>>, vector<1x40x16xbf16>
    %1 = vector.shape_cast %0 : vector<1x40x16xbf16> to vector<40x16xbf16>
    %2 = arith.extf %1 : vector<40x16xbf16> to vector<40x16xf32>
    %c0_2 = arith.constant 0 : index
    %c0_3 = arith.constant 0 : index
    %3 = vector.load %arg3[%c0_2, %c0_3] : memref<1x16xf32, #tpu.memory_space<vmem>>, vector<1x16xf32>
    %4 = vector.broadcast %3 : vector<1x16xf32> to vector<40x16xf32>
    %5 = arith.mulf %2, %4 : vector<40x16xf32>
    %c0_4 = arith.constant 0 : index
    %c0_5 = arith.constant 0 : index
    %6 = vector.load %arg4[%c0_4, %c0_5] : memref<1x16xf32, #tpu.memory_space<vmem>>, vector<1x16xf32>
    %7 = vector.broadcast %6 : vector<1x16xf32> to vector<40x16xf32>
    %8 = arith.addf %5, %7 : vector<40x16xf32>
    %c0_6 = arith.constant 0 : index
    %c0_7 = arith.constant 0 : index
    %9 = vector.load %arg2[%c0_6, %c0_7] : memref<40x1xf32, #tpu.memory_space<vmem>>, vector<40x1xf32>
    %10 = vector.broadcast %9 : vector<40x1xf32> to vector<40x16xf32>
    %11 = arith.mulf %8, %10 : vector<40x16xf32>
    %12 = arith.truncf %11 : vector<40x16xf32> to vector<40x16xbf16>
    %c0_8 = arith.constant 0 : index
    %c0_9 = arith.constant 0 : index
    %13 = vector.load %arg5[%c0_8, %c0_9] : memref<16x512xbf16, #tpu.memory_space<vmem>>, vector<16x512xbf16>
    %cst = arith.constant dense<0.000000e+00> : vector<40x512xf32>
    %14 = tpu.matmul %12, %13, %cst {dimension_numbers = #tpu.dot_dimension_numbers<[1], [0], [0], [1], [0, 0, 1, 1], [], []>} : vector<40x16xbf16>, vector<16x512xbf16>, vector<40x512xf32> -> vector<40x512xf32>
    %15 = vector.shape_cast %14 : vector<40x512xf32> to vector<5x8x512xf32>
    %16 = vector.extract_strided_slice %15 {offsets = [0, 0, 0], sizes = [4, 4, 128], strides = [1, 1, 1]} : vector<5x8x512xf32> to vector<4x4x128xf32>
    %17 = vector.extract_strided_slice %15 {offsets = [0, 1, 128], sizes = [4, 4, 128], strides = [1, 1, 1]} : vector<5x8x512xf32> to vector<4x4x128xf32>
    %18 = arith.addf %16, %17 : vector<4x4x128xf32>
    %19 = vector.extract_strided_slice %15 {offsets = [1, 0, 256], sizes = [4, 4, 128], strides = [1, 1, 1]} : vector<5x8x512xf32> to vector<4x4x128xf32>
    %20 = arith.addf %18, %19 : vector<4x4x128xf32>
    %21 = vector.extract_strided_slice %15 {offsets = [1, 1, 384], sizes = [4, 4, 128], strides = [1, 1, 1]} : vector<5x8x512xf32> to vector<4x4x128xf32>
    %22 = arith.addf %20, %21 : vector<4x4x128xf32>
    %c0_10 = arith.constant 0 : index
    %c0_11 = arith.constant 0 : index
    %23 = vector.load %arg6[%c0_10, %c0_11] : memref<1x128xf32, #tpu.memory_space<vmem>>, vector<1x128xf32>
    %24 = vector.shape_cast %23 : vector<1x128xf32> to vector<1x1x128xf32>
    %25 = vector.broadcast %24 : vector<1x1x128xf32> to vector<4x4x128xf32>
    %26 = arith.addf %22, %25 : vector<4x4x128xf32>
    %cst_12 = arith.constant 0.000000e+00 : f32
    %27 = vector.broadcast %cst_12 : f32 to vector<4x4x128xf32>
    %28 = arith.maximumf %26, %27 : vector<4x4x128xf32>
    %29 = arith.truncf %28 : vector<4x4x128xf32> to vector<4x4x128xbf16>
    %c0_13 = arith.constant 0 : index
    %c0_14 = arith.constant 0 : index
    %c0_15 = arith.constant 0 : index
    %c0_16 = arith.constant 0 : index
    %30 = vector.load %arg7[%c0_13, %c0_14, %c0_15, %c0_16] : memref<1x4x4x128xbf16, #tpu.memory_space<vmem>>, vector<1x4x4x128xbf16>
    %31 = vector.shape_cast %30 : vector<1x4x4x128xbf16> to vector<4x4x128xbf16>
    %32 = vector.shape_cast %29 : vector<4x4x128xbf16> to vector<1x4x4x128xbf16>
    tpu.vector_store %arg7[%c0_13, %c0_14, %c0_15, %c0_16], %32 {strides = array<i32>} : memref<1x4x4x128xbf16, #tpu.memory_space<vmem>>, vector<1x4x4x128xbf16>,
    %cst_17 = arith.constant dense<0.000000e+00> : vector<128xf32>
    %33 = vector.multi_reduction <add>, %28, %cst_17 [0, 1] : vector<4x4x128xf32> to vector<128xf32>
    %34 = vector.shape_cast %33 : vector<128xf32> to vector<1x1x128xf32>
    %c0_18 = arith.constant 0 : index
    %c0_19 = arith.constant 0 : index
    %c0_20 = arith.constant 0 : index
    %35 = vector.load %arg8[%c0_18, %c0_19, %c0_20] : memref<1x1x128xf32, #tpu.memory_space<vmem>>, vector<1x1x128xf32>
    tpu.vector_store %arg8[%c0_18, %c0_19, %c0_20], %34 {strides = array<i32>} : memref<1x1x128xf32, #tpu.memory_space<vmem>>, vector<1x1x128xf32>,
    %36 = arith.mulf %28, %28 : vector<4x4x128xf32>
    %cst_21 = arith.constant dense<0.000000e+00> : vector<128xf32>
    %37 = vector.multi_reduction <add>, %36, %cst_21 [0, 1] : vector<4x4x128xf32> to vector<128xf32>
    %38 = vector.shape_cast %37 : vector<128xf32> to vector<1x1x128xf32>
    %c0_22 = arith.constant 0 : index
    %c0_23 = arith.constant 0 : index
    %c0_24 = arith.constant 0 : index
    %39 = vector.load %arg9[%c0_22, %c0_23, %c0_24] : memref<1x1x128xf32, #tpu.memory_space<vmem>>, vector<1x1x128xf32>
    tpu.vector_store %arg9[%c0_22, %c0_23, %c0_24], %38 {strides = array<i32>} : memref<1x1x128xf32, #tpu.memory_space<vmem>>, vector<1x1x128xf32>,
    return
  }
  func.func @transform_0(%arg0: i32) -> (i32, i32, i32) {
    %c0_i32 = arith.constant 0 : i32
    %c0_i32_0 = arith.constant 0 : i32
    %c0_i32_1 = arith.constant 0 : i32
    return %arg0, %c0_i32, %c0_i32_0 : i32, i32, i32
  }
  func.func @transform_1(%arg0: i32) -> (i32, i32) {
    %c0_i32 = arith.constant 0 : i32
    %c0_i32_0 = arith.constant 0 : i32
    %c0_i32_1 = arith.constant 0 : i32
    return %c0_i32, %c0_i32_0 : i32, i32
  }
  func.func @transform_2(%arg0: i32) -> (i32, i32) {
    %c0_i32 = arith.constant 0 : i32
    %c0_i32_0 = arith.constant 0 : i32
    %c0_i32_1 = arith.constant 0 : i32
    return %c0_i32, %c0_i32_0 : i32, i32
  }
  func.func @transform_3(%arg0: i32) -> (i32, i32) {
    %c0_i32 = arith.constant 0 : i32
    %c0_i32_0 = arith.constant 0 : i32
    %c0_i32_1 = arith.constant 0 : i32
    return %c0_i32, %c0_i32_0 : i32, i32
  }
  func.func @transform_4(%arg0: i32) -> (i32, i32) {
    %c0_i32 = arith.constant 0 : i32
    %c0_i32_0 = arith.constant 0 : i32
    %c0_i32_1 = arith.constant 0 : i32
    return %c0_i32, %c0_i32_0 : i32, i32
  }
  func.func @transform_5(%arg0: i32) -> (i32, i32) {
    %c0_i32 = arith.constant 0 : i32
    %c0_i32_0 = arith.constant 0 : i32
    %c0_i32_1 = arith.constant 0 : i32
    return %c0_i32, %c0_i32_0 : i32, i32
  }
  func.func @transform_6(%arg0: i32) -> (i32, i32, i32, i32) {
    %c0_i32 = arith.constant 0 : i32
    %c0_i32_0 = arith.constant 0 : i32
    %c0_i32_1 = arith.constant 0 : i32
    %c0_i32_2 = arith.constant 0 : i32
    return %arg0, %c0_i32, %c0_i32_0, %c0_i32_1 : i32, i32, i32, i32
  }
  func.func @transform_7(%arg0: i32) -> (i32, i32, i32) {
    %c0_i32 = arith.constant 0 : i32
    %c0_i32_0 = arith.constant 0 : i32
    %c0_i32_1 = arith.constant 0 : i32
    return %arg0, %c0_i32, %c0_i32_0 : i32, i32, i32
  }
  func.func @transform_8(%arg0: i32) -> (i32, i32, i32) {
    %c0_i32 = arith.constant 0 : i32
    %c0_i32_0 = arith.constant 0 : i32
    %c0_i32_1 = arith.constant 0 : i32
    return %arg0, %c0_i32, %c0_i32_0 : i32, i32, i32
  }
}

module attributes {stable_mosaic.version = 11 : i64} {
  func.func @heads_kernel(%arg0: i32, %arg1: memref<2x2048xbf16, #tpu.memory_space<vmem>>, %arg2: memref<1x2048xf32, #tpu.memory_space<vmem>>, %arg3: memref<1x2048xf32, #tpu.memory_space<vmem>>, %arg4: memref<2048x128xbf16, #tpu.memory_space<vmem>>, %arg5: memref<1x128xf32, #tpu.memory_space<vmem>>, %arg6: memref<2x128xf32, #tpu.memory_space<vmem>>) attributes {dimension_semantics = [#tpu.dimension_semantics<arbitrary>], iteration_bounds = array<i64: 1>, scalar_prefetch = 0 : i64, scratch_operands = 0 : i64, tpu.core_type = #tpu.core_type<tc>, window_params = [{pipeline_mode = #tpu.pipeline_mode<synchronous>, transform_indices = @transform_0, window_bounds = array<i64: 2, 2048>}, {pipeline_mode = #tpu.pipeline_mode<synchronous>, transform_indices = @transform_1, window_bounds = array<i64: 1, 2048>}, {pipeline_mode = #tpu.pipeline_mode<synchronous>, transform_indices = @transform_2, window_bounds = array<i64: 1, 2048>}, {pipeline_mode = #tpu.pipeline_mode<synchronous>, transform_indices = @transform_3, window_bounds = array<i64: 2048, 128>}, {pipeline_mode = #tpu.pipeline_mode<synchronous>, transform_indices = @transform_4, window_bounds = array<i64: 1, 128>}, {pipeline_mode = #tpu.pipeline_mode<synchronous>, transform_indices = @transform_5, window_bounds = array<i64: 2, 128>}]} {
    %c0 = arith.constant 0 : index
    %c0_0 = arith.constant 0 : index
    %0 = vector.load %arg1[%c0, %c0_0] : memref<2x2048xbf16, #tpu.memory_space<vmem>>, vector<2x2048xbf16>
    %1 = arith.extf %0 : vector<2x2048xbf16> to vector<2x2048xf32>
    %c0_1 = arith.constant 0 : index
    %c0_2 = arith.constant 0 : index
    %2 = vector.load %arg2[%c0_1, %c0_2] : memref<1x2048xf32, #tpu.memory_space<vmem>>, vector<1x2048xf32>
    %3 = vector.broadcast %2 : vector<1x2048xf32> to vector<2x2048xf32>
    %4 = arith.mulf %1, %3 : vector<2x2048xf32>
    %c0_3 = arith.constant 0 : index
    %c0_4 = arith.constant 0 : index
    %5 = vector.load %arg3[%c0_3, %c0_4] : memref<1x2048xf32, #tpu.memory_space<vmem>>, vector<1x2048xf32>
    %6 = vector.broadcast %5 : vector<1x2048xf32> to vector<2x2048xf32>
    %7 = arith.addf %4, %6 : vector<2x2048xf32>
    %8 = arith.truncf %7 : vector<2x2048xf32> to vector<2x2048xbf16>
    %c0_5 = arith.constant 0 : index
    %c0_6 = arith.constant 0 : index
    %9 = vector.load %arg4[%c0_5, %c0_6] : memref<2048x128xbf16, #tpu.memory_space<vmem>>, vector<2048x128xbf16>
    %cst = arith.constant dense<0.000000e+00> : vector<2x128xf32>
    %10 = tpu.matmul %8, %9, %cst {dimension_numbers = #tpu.dot_dimension_numbers<[1], [0], [0], [1], [0, 0, 1, 1], [], []>} : vector<2x2048xbf16>, vector<2048x128xbf16>, vector<2x128xf32> -> vector<2x128xf32>
    %c0_7 = arith.constant 0 : index
    %c0_8 = arith.constant 0 : index
    %11 = vector.load %arg5[%c0_7, %c0_8] : memref<1x128xf32, #tpu.memory_space<vmem>>, vector<1x128xf32>
    %12 = vector.broadcast %11 : vector<1x128xf32> to vector<2x128xf32>
    %13 = arith.addf %10, %12 : vector<2x128xf32>
    %c0_9 = arith.constant 0 : index
    %c0_10 = arith.constant 0 : index
    %14 = vector.load %arg6[%c0_9, %c0_10] : memref<2x128xf32, #tpu.memory_space<vmem>>, vector<2x128xf32>
    tpu.vector_store %arg6[%c0_9, %c0_10], %13 {strides = array<i32>} : memref<2x128xf32, #tpu.memory_space<vmem>>, vector<2x128xf32>,
    return
  }
  func.func @transform_0(%arg0: i32) -> (i32, i32) {
    %c0_i32 = arith.constant 0 : i32
    %c0_i32_0 = arith.constant 0 : i32
    %c0_i32_1 = arith.constant 0 : i32
    return %c0_i32, %c0_i32_0 : i32, i32
  }
  func.func @transform_1(%arg0: i32) -> (i32, i32) {
    %c0_i32 = arith.constant 0 : i32
    %c0_i32_0 = arith.constant 0 : i32
    %c0_i32_1 = arith.constant 0 : i32
    return %c0_i32, %c0_i32_0 : i32, i32
  }
  func.func @transform_2(%arg0: i32) -> (i32, i32) {
    %c0_i32 = arith.constant 0 : i32
    %c0_i32_0 = arith.constant 0 : i32
    %c0_i32_1 = arith.constant 0 : i32
    return %c0_i32, %c0_i32_0 : i32, i32
  }
  func.func @transform_3(%arg0: i32) -> (i32, i32) {
    %c0_i32 = arith.constant 0 : i32
    %c0_i32_0 = arith.constant 0 : i32
    %c0_i32_1 = arith.constant 0 : i32
    return %c0_i32, %c0_i32_0 : i32, i32
  }
  func.func @transform_4(%arg0: i32) -> (i32, i32) {
    %c0_i32 = arith.constant 0 : i32
    %c0_i32_0 = arith.constant 0 : i32
    %c0_i32_1 = arith.constant 0 : i32
    return %c0_i32, %c0_i32_0 : i32, i32
  }
  func.func @transform_5(%arg0: i32) -> (i32, i32) {
    %c0_i32 = arith.constant 0 : i32
    %c0_i32_0 = arith.constant 0 : i32
    %c0_i32_1 = arith.constant 0 : i32
    return %c0_i32, %c0_i32_0 : i32, i32
  }
}

</mosaic_0001>

<bundles_post_ra>
// kernel: tile.13
= control target key start
LH: loop header
LB: loop body
LE: loop exit
PB: predicated region body
PF: predicated region fallthrough
CT: control target
= control target key end

     0   :  { %s22_s0 = inlined_call_operand.vmem [shape: f32[4], index: 0, kind: input, shape index: {}]   ;;  %s23_s1 = inlined_call_operand.vmem [shape: f32[4,4], index: 1, kind: output, shape index: {}]  }
   0x1   :  { %v4_v0 = vld [vmem:[%s22_s0] ss:$0 sm:$0xff] }
   0x2   :  { %5 = vst [vmem:[%s23_s1] sm:$0xf] %v4_v0 }

// kernel: tile.14
= control target key start
LH: loop header
LB: loop body
LE: loop exit
PB: predicated region body
PF: predicated region fallthrough
CT: control target
= control target key end

     0   :  { %vm8_vm0 = vcmask 31744   ;;  %s40_s8 = smov 4   ;;  %s41_s9 = smov 8   ;;  %vm14_vm1 = vcmask 130144   ;;  %vm20_vm2 = vcmask 97344   ;;  %vm26_vm3 = vcmask 64544   ;;  %s58_s0 = inlined_call_operand.vmem [shape: f32[4,4], index: 0, kind: input, shape index: {}]   ;;  %s59_s1 = inlined_call_operand.vmem [shape: f32[1,16], index: 1, kind: output, shape index: {}]  }
   0x1   :  { %v5_v0 = vld [vmem:[%s58_s0] sm:$0xf]  ;;  %s39_s0 = smov 12  }
   0x2   :  { %6 = vst [vmem:[#allocation1] sm:$0xf] %v5_v0 }
   0x9   :  { %v11_v1 = vld [vmem:[#allocation1 + $0x3] sm:$0x1]   ;;  %v23_v2 = vld [vmem:[#allocation1 + $0x1] sm:$0x1]   ;;  %v7_v3 = vld [vmem:[#allocation1] sm:$0x1]  }
   0xa   :  { %12 = vrot.lane.b32.xlu0 %v11_v1, %s39_s0  ;;  %24 = vrot.lane.b32.xlu1 %v23_v2, %s40_s8  ;;  %v17_v4 = vld [vmem:[#allocation1 + $0x2] sm:$0x1]   ;;  %9 = vst.msk [vmem:[#allocation0] sm:$0x1] %vm8_vm0, %v7_v3  }
   0xe   :  { %18 = vrot.lane.b32.xlu0 %v17_v4, %s41_s9 }
  0x7c   :  { %v13_v5 = vpop.permute.xlu0 %12   ;;  %v25_v6 = vpop.permute.xlu1 %24  }
  0x7d   :  { %15 = vst.msk [vmem:[#allocation0] sm:$0x1] %vm14_vm1, %v13_v5  }
  0x80   :  { %v19_v7 = vpop.permute.xlu0 %18  }
  0x81   :  { %21 = vst.msk [vmem:[#allocation0] sm:$0x1] %vm20_vm2, %v19_v7  }
  0x82   :  { %27 = vst.msk [vmem:[#allocation0] sm:$0x1] %vm26_vm3, %v25_v6  }
  0x89   :  { %v32_v8 = vld [vmem:[#allocation0] sm:$0x1] }
  0x8a   :  { %35 = vst [vmem:[%s59_s1] sm:$0x1] %v32_v8 }

// kernel: encoder_forward.4
= control target key start
LH: loop header
LB: loop body
LE: loop exit
PB: predicated region body
PF: predicated region fallthrough
CT: control target
= control target key end

     0   :  { %s850_s27 = smov 0   ;;  %s943_s0 = inlined_call_operand.vmem [shape: bf16[2,40,16], index: 0, kind: input, shape index: {}]   ;;  %s944_s1 = inlined_call_operand.vmem [shape: f32[40,1], index: 1, kind: input, shape index: {}]   ;;  %s945_s2 = inlined_call_operand.vmem [shape: f32[1,16], index: 2, kind: input, shape index: {}]   ;;  %s946_s3 = inlined_call_operand.vmem [shape: f32[1,16], index: 3, kind: input, shape index: {}]   ;;  %s947_s4 = inlined_call_operand.vmem [shape: bf16[16,512], index: 4, kind: input, shape index: {}]   ;;  %s948_s5 = inlined_call_operand.vmem [shape: f32[1,128], index: 5, kind: input, shape index: {}]   ;;  %s949_s6 = inlined_call_operand.vmem [shape: bf16[2,4,4,128], index: 6, kind: output, shape index: {0}]   ;;  %s950_s7 = inlined_call_operand.vmem [shape: f32[2,1,128], index: 7, kind: output, shape index: {1}]   ;;  %s951_s8 = inlined_call_operand.vmem [shape: f32[2,1,128], index: 8, kind: output, shape index: {2}]  }
   0x1 LB: > { %s745_s28 = sadd.s32 4294967295, %s802_s27   ;;  %p749_p0 = scmp.ge.s32.totalorder %s802_s27, 1  ;;  %s802_s27 = sphi %s850_s27, %s19_s27  }
   0x2   : > { %p267_p1 = scmp.lt.s32.totalorder %s802_s27, 3 }
   0x4   : > { %p268_p2 = pnand %p749_p0, %p267_p1 }
   0x5   : > { %p307_p3 = scmp.lt.s32.totalorder (!%p268_p2), %s745_s28, 1 }
   0x6   : > { %271 = sbr.rel (%p268_p2) target bundleno = 382 (0x17e), region = 44 }
   0xb   : > { %v358_v0 = vld [vmem:[%s944_s1] sm:$0xff]  ;;  %v360_v1 = vld [vmem:[%s944_s1 + $0x10] sm:$0xff]  ;;  %v804_v2 = vmov 0   ;;  %v359_v3 = vld [vmem:[%s944_s1 + $0x8] sm:$0xff]  ;;  %s953_s28 = smov (!%p307_p3, %s745_s28), 1  ;;  %vm420_vm0 = vcmask 130048  }
   0xc   : > { %788 = vset.pattern.permute.xlu0 %v804_v2  ;;  %789 = vset.pattern.permute.xlu1 %v804_v2  ;;  %v361_v4 = vld [vmem:[%s944_s1 + $0x18] sm:$0xff]  ;;  %v790_v5 = vld [vmem:[%s947_s4 + $0x4] ss:$16 sps:$4 sm:$0xff]   ;;  %v794_v7 = vld [vmem:[%s947_s4] ss:$16 sps:$4 sm:$0xff]   ;;  %s778_s25 = smul.u32 20, %s953_s28  ;;  %s319_s21 = scalar_lea.vmem %s950_s7, %s953_s28 }
   0xd   : > { %365 = vperm.xlu0 %788, %v358_v0   ;;  %375 = vperm.xlu1 %789, %v360_v1   ;;  %v792_v6 = vld [vmem:[%s947_s4 + $0xc] ss:$16 sps:$4 sm:$0xff]   ;;  %v795_v8 = vld [vmem:[%s947_s4 + $0x8] ss:$16 sps:$4 sm:$0xff]   ;;  %v362_v9 = vld [vmem:[%s944_s1 + $0x20] sm:$0xff]  ;;  %s768_s15 = sshll.u32 %s953_s28, 3  ;;  %s322_s24 = scalar_lea.vmem %s951_s8, %s953_s28 }
   0xe   : > { %462 = vmatprep.mubr.bf16.mxu0 %v804_v2  ;;  %521 = vmatprep.mubr.bf16.mxu1 %v804_v2  ;;  %s311_s30 = scalar_lea.vmem %s943_s0, %s778_s25  ;;  %v753_v13 = vld [vmem:[%s945_s2] ss:$0 sm:$0xff]  ;;  %s918_s18 = scalar_lea.vmem %s949_s6, %s768_s15  ;;  %vm607_vm1 = vcmask 1043456  }
   0xf   : > { %444 = vmatprep.subr.bf16.mxu0 %v790_v5  ;;  %503 = vmatprep.subr.bf16.mxu1 %v792_v6  ;;  %v770_v10 = vld [vmem:[%s311_s30] sm:$0xff]   ;;  %v777_v14 = vld [vmem:[%s311_s30 + $0x8] sm:$0xff]   ;;  %v328_v27 = vld [vmem:[%s311_s30 + $0x10] sm:$0xf] }
  0x10   : > { %445 = vmatpush1.bf16.msra.mxu0 %v794_v7  ;;  %504 = vmatpush1.bf16.msra.mxu1 %v795_v8  ;;  %v771_v11 = vunpack.c.l.bf16 %v770_v10  ;;  %v772_v12 = vunpack.c.h.bf16 %v770_v10  ;;  %v754_v17 = vld [vmem:[%s946_s3] ss:$0 sm:$0xff]  ;;  %v775_v18 = vunpack.c.l.bf16 %v777_v14  ;;  %v776_v19 = vunpack.c.h.bf16 %v777_v14 }
  0x11   : > { %370 = vperm.xlu0 %788, %v359_v3   ;;  %380 = vperm.xlu1 %789, %v361_v4   ;;  %v333_v33 = vunpack.c.l.bf16 %v328_v27  ;;  %v765_v56 = vld [vmem:[%s948_s5] ss:$0 sm:$0xff] }
  0x12   : > { %v341_v15 = vmul.f32 %v771_v11, %v753_v13  ;;  %v342_v16 = vmul.f32 %v772_v12, %v753_v13  ;;  %v343_v24 = vmul.f32 %v775_v18, %v753_v13  ;;  %v344_v25 = vmul.f32 %v776_v19, %v753_v13 }
  0x13   : > { %v345_v37 = vmul.f32 %v753_v13, %v333_v33 }
  0x14   : > { %v353_v21 = vadd.f32 %v754_v17, %v341_v15  ;;  %v354_v22 = vadd.f32 %v754_v17, %v342_v16  ;;  %v355_v30 = vadd.f32 %v754_v17, %v343_v24  ;;  %v356_v32 = vadd.f32 %v754_v17, %v344_v25 }
  0x15   : > { %385 = vperm.xlu0 %788, %v362_v9   ;;  %v357_v39 = vadd.f32 %v754_v17, %v345_v37 }
  0x88   : > { %v366_v20 = vpop.permute.xlu0 %365  ;;  %v376_v23 = vpop.permute.xlu1 %375 }
  0x89   : > { %v388_v28 = vmul.f32 %v366_v20, %v353_v21  ;;  %v390_v35 = vmul.f32 %v376_v23, %v355_v30 }
  0x8c   : > { %v371_v26 = vpop.permute.xlu0 %370  ;;  %v381_v34 = vpop.permute.xlu1 %380 }
  0x8d   : > { %v389_v29 = vmul.f32 %v371_v26, %v354_v22  ;;  %v391_v36 = vmul.f32 %v381_v34, %v356_v32 }
  0x8f   : > { %v393_v31 = vpack.c.bf16 %v389_v29, %v388_v28  ;;  %v394_v38 = vpack.c.bf16 %v391_v36, %v390_v35 }
  0x90   : > { %v386_v40 = vpop.permute.xlu0 %385 }
  0x91   : > { %759 = vmatmul.mubr.msk.bf16.vlgmr.msra.gmra.mxu0 %vm420_vm0, %v393_v31  ;;  %762 = vmatmul.mubr.msk.bf16.vlgmr.msra.gmra.mxu1 %vm420_vm0, %v393_v31  ;;  %v392_v41 = vmul.f32 %v386_v40, %v357_v39 }
  0x92   : > { %472 = vmatprep.mubr.bf16.mxu0 %v804_v2  ;;  %529 = vmatprep.mubr.bf16.mxu1 %v804_v2 }
  0x93   : > { %v395_v42 = vpack.c.bf16 %v392_v41, %v392_v41 }
  0x99   : > { %760 = vmatmul.mubr.msk.bf16.gmra.mxu0 %vm420_vm0, %v394_v38  ;;  %763 = vmatmul.mubr.msk.bf16.gmra.mxu1 %vm420_vm0, %v394_v38 }
  0x9a   : > { %482 = vmatprep.mubr.bf16.mxu0 %v804_v2  ;;  %539 = vmatprep.mubr.bf16.mxu1 %v804_v2 }
  0xa1   : > { %761 = vmatmul.mubr.msk.bf16.gmra.mxu0 %vm420_vm0, %v395_v42  ;;  %764 = vmatmul.mubr.msk.bf16.gmra.mxu1 %vm420_vm0, %v395_v42 }
 0x151   : > { %v464_v43 = vpop.f32.mrf.mxu0  ;;  %v523_v44 = vpop.f32.mrf.mxu1 }
 0x153   : > { %v466_v45 = vpop.f32.mrf.mxu0  ;;  %v524_v46 = vpop.f32.mrf.mxu1 }
 0x154   : > { %v552_v47 = vrot.slane %v466_v45, 1 }
 0x155   : > { %v468_v48 = vpop.f32.mrf.mxu0  ;;  %v525_v49 = vpop.f32.mrf.mxu1 }
 0x156   : > { %v560_v50 = vadd.f32 %v552_v47, %v464_v43 }
 0x157   : > { %v470_v51 = vpop.f32.mrf.mxu0  ;;  %v527_v52 = vpop.f32.mrf.mxu1 }
 0x158   : > { %v564_v53 = vadd.f32 %v560_v50, %v525_v49  ;;  %v553_v54 = vrot.slane %v470_v51, 1  ;;  %v572_v55 = vrot.slane %v527_v52, 1 }
 0x159   : > { %v474_v57 = vpop.f32.mrf.mxu0  ;;  %v531_v58 = vpop.f32.mrf.mxu1 }
 0x15a   : > { %v580_v59 = vadd.f32 %v572_v55, %v564_v53  ;;  %v561_v60 = vadd.f32 %v553_v54, %v468_v48 }
 0x15b   : > { %v476_v61 = vpop.f32.mrf.mxu0  ;;  %v533_v62 = vpop.f32.mrf.mxu1 }
 0x15c   : > { %v591_v63 = vadd.f32 %v765_v56, %v580_v59  ;;  %v565_v0 = vadd.f32 %v561_v60, %v531_v58  ;;  %v554_v1 = vrot.slane %v476_v61, 1  ;;  %v573_v2 = vrot.slane %v533_v62, 1 }
 0x15d   : > { %v478_v3 = vpop.f32.mrf.mxu0  ;;  %v535_v4 = vpop.f32.mrf.mxu1 }
 0x15e   : > { %v595_v5 = vmax.f32 %v591_v63, 0.0  ;;  %v581_v6 = vadd.f32 %v573_v2, %v565_v0  ;;  %v562_v7 = vadd.f32 %v554_v1, %v474_v57 }
 0x15f   : > { %v480_v8 = vpop.f32.mrf.mxu0  ;;  %v537_v9 = vpop.f32.mrf.mxu1 }
 0x160   : > { %v599_v10 = vpack.c.bf16 %v595_v5, %v595_v5  ;;  %v592_v11 = vadd.f32 %v765_v56, %v581_v6  ;;  %v566_v12 = vadd.f32 %v562_v7, %v535_v4  ;;  %v555_v13 = vrot.slane %v480_v8, 1 }
 0x161   : > { %v574_v14 = vrot.slane %v537_v9, 1  ;;  %v484_v15 = vpop.f32.mrf.mxu0  ;;  %v541_v16 = vpop.f32.mrf.mxu1  ;;  %v622_v29 = vmul.f32 %v595_v5, %v595_v5  ;;  %v608_v35 = vsel %vm607_vm1, %v595_v5, 0.0 }
 0x162   : > { %603 = vst [vmem:[%s918_s18] sm:$0x3] %v599_v10  ;;  %v596_v17 = vmax.f32 %v592_v11, 0.0  ;;  %v563_v19 = vadd.f32 %v555_v13, %v478_v3 }
 0x163   : > { %v582_v18 = vadd.f32 %v574_v14, %v566_v12  ;;  %v485_v20 = vpop.f32.mrf.mxu0  ;;  %v543_v21 = vpop.f32.mrf.mxu1  ;;  %v626_v42 = vsel %vm607_vm1, %v622_v29, 0.0 }
 0x164   : > { %v600_v22 = vpack.c.bf16 %v596_v17, %v596_v17  ;;  %v623_v23 = vmul.f32 %v596_v17, %v596_v17  ;;  %v575_v24 = vrot.slane %v543_v21, 1  ;;  %v567_v26 = vadd.f32 %v563_v19, %v541_v16 }
 0x165   : > { %v593_v25 = vadd.f32 %v765_v56, %v582_v18  ;;  %v486_v27 = vpop.f32.mrf.mxu0  ;;  %v545_v28 = vpop.f32.mrf.mxu1  ;;  %v609_v30 = vsel %vm607_vm1, %v596_v17, 0.0 }
 0x166   : > { %604 = vst [vmem:[%s918_s18 + $0x2] sm:$0x3] %v600_v22  ;;  %v583_v32 = vadd.f32 %v575_v24, %v567_v26  ;;  %v627_v36 = vsel %vm607_vm1, %v623_v23, 0.0  ;;  %v610_v41 = vadd.f32 %v609_v30, %v608_v35 }
 0x167   : > { %v597_v31 = vmax.f32 %v593_v25, 0.0  ;;  %v487_v33 = vpop.f32.mrf.mxu0  ;;  %v546_v34 = vpop.f32.mrf.mxu1  ;;  %v628_v45 = vadd.f32 %v627_v36, %v626_v42 }
 0x168   : > { %v594_v40 = vadd.f32 %v765_v56, %v583_v32 }
 0x169   : > { %v601_v37 = vpack.c.bf16 %v597_v31, %v597_v31  ;;  %v611_v38 = vsel %vm607_vm1, %v597_v31, 0.0  ;;  %v624_v39 = vmul.f32 %v597_v31, %v597_v31 }
 0x16a   : > { %v598_v44 = vmax.f32 %v594_v40, 0.0  ;;  %v612_v46 = vadd.f32 %v611_v38, %v610_v41 }
 0x16b   : > { %605 = vst [vmem:[%s918_s18 + $0x4] sm:$0x3] %v601_v37  ;;  %v629_v43 = vsel %vm607_vm1, %v624_v39, 0.0 }
 0x16c   : > { %v602_v47 = vpack.c.bf16 %v598_v44, %v598_v44  ;;  %v613_v48 = vsel %vm607_vm1, %v598_v44, 0.0  ;;  %v625_v49 = vmul.f32 %v598_v44, %v598_v44  ;;  %v630_v50 = vadd.f32 %v629_v43, %v628_v45 }
 0x16d   : > { %v614_v51 = vadd.f32 %v613_v48, %v612_v46 }
 0x16e   : > { %606 = vst [vmem:[%s918_s18 + $0x6] sm:$0x3] %v602_v47  ;;  %v631_v52 = vsel %vm607_vm1, %v625_v49, 0.0 }
 0x16f   : > { %v615_v53 = vrot.slane %v614_v51, 4  ;;  %v632_v54 = vadd.f32 %v631_v52, %v630_v50 }
 0x171   : > { %v616_v55 = vadd.f32 %v615_v53, %v614_v51  ;;  %v633_v56 = vrot.slane %v632_v54, 4 }
 0x173   : > { %v617_v57 = vrot.slane %v616_v55, 2  ;;  %v634_v58 = vadd.f32 %v633_v56, %v632_v54 }
 0x175   : > { %v618_v59 = vadd.f32 %v617_v57, %v616_v55  ;;  %v635_v60 = vrot.slane %v634_v58, 2 }
 0x177   : > { %v619_v61 = vrot.slane %v618_v59, 1  ;;  %v636_v62 = vadd.f32 %v635_v60, %v634_v58 }
 0x179   : > { %v620_v63 = vadd.f32 %v619_v61, %v618_v59  ;;  %v637_v0 = vrot.slane %v636_v62, 1 }
 0x17b   : > { %621 = vst [vmem:[%s319_s21] sm:$0x1] %v620_v63  ;;  %v638_v1 = vadd.f32 %v637_v0, %v636_v62 }
 0x17d   : > { %639 = vst [vmem:[%s322_s24] sm:$0x1] %v638_v1 }
 0x17e PF: > { %s19_s27 = sadd.s32 1, %s802_s27  }
 0x17f   : > { %p16_p4 = scmp.ge.s32.totalorder %s19_s27, 4  }
 0x181   :  { %18 = sbr.rel (!%p16_p4) target bundleno = 1 (0x1), region = 98 }

// kernel: encoder_forward.3
= control target key start
LH: loop header
LB: loop body
LE: loop exit
PB: predicated region body
PF: predicated region fallthrough
CT: control target
= control target key end

     0   :  { %14 = vsyncpa [#allocation3], 0  ;;  %s1722_s0 = inlined_call_operand.vmem [shape: bf16[2,144,4], index: 0, kind: input, shape index: {}]   ;;  %s1723_s1 = inlined_call_operand.vmem [shape: f32[144,1], index: 1, kind: input, shape index: {}]   ;;  %s1724_s2 = inlined_call_operand.vmem [shape: f32[1,4], index: 2, kind: input, shape index: {}]   ;;  %s1725_s3 = inlined_call_operand.vmem [shape: f32[1,4], index: 3, kind: input, shape index: {}]   ;;  %s1726_s4 = inlined_call_operand.hbm [shape: bf16[4,512], index: 4, kind: input, shape index: {}]   ;;  %s1727_s5 = inlined_call_operand.hbm [shape: f32[1,128], index: 5, kind: input, shape index: {}]   ;;  %s1728_s6 = inlined_call_operand.vmem [shape: bf16[2,8,8,128], index: 6, kind: output, shape index: {0}]   ;;  %s1729_s7 = inlined_call_operand.vmem [shape: f32[2,1,128], index: 7, kind: output, shape index: {1}]   ;;  %s1730_s8 = inlined_call_operand.vmem [shape: f32[2,1,128], index: 8, kind: output, shape index: {2}]  }
   0x1   :  { %15 = vsyncpa [#allocation5], 0  ;;  %s1433_s27 = smov 0  }
   0x2 LB: > { %s1439_s28 = sadd.s32 4294967295, %s1382_s27   ;;  %p1178_p0 = scmp.ge.s32.totalorder %s1382_s27, 1  ;;  %s1382_s27 = sphi %s1433_s27, %s21_s27  }
   0x3   : > { %p235_p1 = scmp.lt.s32.totalorder %s1382_s27, 3  ;;  %p1731_p2 = scmp.eq.s32.totalorder %s1439_s28, 0 }
   0x4   : > { %s1384_s30 = smov [#allocation2]   ;;  %s1385_s10 = smov [#allocation4]  }
   0x5   : > { %p1444_p3 = pnand %p1178_p0, %p235_p1  ;;  %s257_s9 = sshll.u32 %s1384_s30, 4  ;;  %s258_s9 = int_to_ptr.vmem [resolvable:$true] %s257_s9 }
   0x6   : > { %s268_s11 = sshll.u32 %s1385_s10, 4  ;;  %s1327_s13 = scalar_lea.vmem %s258_s9, 128  ;;  %s269_s11 = int_to_ptr.vmem [resolvable:$true] %s268_s11 }
   0x7   : > { %p1290_p4 = pneg %p1444_p3  ;;  %p1328_p7 = scmp.ne.s32.totalorder %s258_s9, %s1327_s13 }
   0x8   : > { %p1335_p10 = scmp.lt.s32.totalorder %s258_s9, %s258_s9  ;;  %p1336_p11 = scmp.lt.s32.totalorder %s1327_s13, %s1327_s13 }
   0x9   : > { %p1452_p5 = pnand %p1731_p2, %p1290_p4 }
   0xa   : > { %p1337_p12 = por %p1336_p11, %p1335_p10 }
   0xb   : > { %p1318_p6 = pneg %p1452_p5 }
   0xd   : > { %p1330_p8 = pnand %p1328_p7, %p1318_p6 }
   0xf   : > { %p1331_p9 = pneg %p1330_p8 }
  0x11   : > { %p1338_p13 = pnand %p1337_p12, %p1331_p9 }
  0x13   : > { %1341 = shalt.err (!%p1338_p13)
}
  0x14   : > { %1293 = dma.hbm_to_vmem [thread:$0]  (!%p1452_p5), %s1726_s4, 128, %s258_s9, [#allocation3]  }
  0x15   : > { %s1353_s16 = scalar_lea.vmem %s269_s11, 16  ;;  %s1360_s17 = scalar_lea.vmem %s269_s11, 32 }
  0x16   : > { %p1354_p0 = scmp.ne.s32.totalorder %s269_s11, %s1353_s16  ;;  %p1361_p7 = scmp.lt.s32.totalorder %s269_s11, %s269_s11 }
  0x17   : > { %p1362_p8 = scmp.lt.s32.totalorder %s1360_s17, %s1353_s16 }
  0x18   : > { %p1356_p1 = pnand %p1354_p0, %p1318_p6 }
  0x19   : > { %p1363_p2 = por %p1362_p8, %p1361_p7 }
  0x1a   : > { %p1357_p4 = pneg %p1356_p1 }
  0x1c   : > { %p1364_p10 = pnand %p1363_p2, %p1357_p4 }
  0x1e   : > { %1367 = shalt.err (!%p1364_p10)
}
  0x1f   : > { %1296 = dma.hbm_to_vmem [thread:$0]  (!%p1452_p5), %s1727_s5, 16, %s269_s11, [#allocation5]  }
  0x20   : > { %289 = sbr.rel (%p1444_p3) target bundleno = 466 (0x1d2), region = 44  ;;  %p1734_p9 = scmp.eq.s32.totalorder (!%p1444_p3), %s1439_s28, 0 }
  0x25   : > { %1373 = dma.done.wait (%p1734_p9), [#allocation3], 128   ;;  %p1735_p6 = pmov %p1734_p9 }
  0x27   : > { %1375 = vsyncadd (%p1735_p6), [#allocation3], 4294967168  ;;  %p1736_p11 = pmov %p1735_p6 }
  0x28   : > { %p1737_p2 = pmov %p1735_p6 }
  0x29   : > { %1377 = dma.done.wait (%p1736_p11), [#allocation5], 16  }
  0x2a   : > { %1379 = vsyncadd (%p1737_p2), [#allocation5], 4294967280  ;;  %v1386_v0 = vmov 0   ;;  %v1387_v1 = vmov 1983009808   ;;  %v577_v3 = vlaneseq  ;;  %v438_v4 = vld [vmem:[%s1723_s1 + $0x10] sm:$0xff] }
  0x2b   : > { %1314 = vset.pattern.permute.xlu1 %v1386_v0  ;;  %1313 = vset.pattern.permute.xlu0 %v1386_v0  ;;  %v575_v2 = vunpack.c.l.s4 %v1387_v1  ;;  %v436_v5 = vld [vmem:[%s1723_s1] sm:$0xff]  ;;  %v439_v8 = vld [vmem:[%s1723_s1 + $0x18] sm:$0xff]  ;;  %v437_v9 = vld [vmem:[%s1723_s1 + $0x8] sm:$0xff]  ;;  %vm618_vm0 = vcmask 1041408   ;;  %p333_p3 = scmp.lt.s32.totalorder %s1439_s28, 1  ;;  %vm590_vm1 = vcmask 31744  }
  0x2c   : > { %663 = vmatprep.mubr.bf16.mxu0 %v1386_v0  ;;  %774 = vmatprep.mubr.bf16.mxu1 %v1386_v0  ;;  %v578_v7 = vshrl.u32 %v577_v3, 7  ;;  %v441_v11 = vld [vmem:[%s1723_s1 + $0x28] sm:$0xff]  ;;  %v440_v12 = vld [vmem:[%s1723_s1 + $0x20] sm:$0xff]  ;;  %v443_v16 = vld [vmem:[%s1723_s1 + $0x38] sm:$0xff]  ;;  %vm869_vm2 = vcmask 1046528  }
  0x2d   : > { %v576_v6 = vunpack.c.0.s8 %v575_v2  ;;  %466 = vperm.xlu1 %1314, %v438_v4   ;;  %456 = vperm.xlu0 %1313, %v436_v5   ;;  %v571_v13 = vld [vmem:[#allocation2] sm:$0xff]  ;;  %v442_v17 = vld [vmem:[%s1723_s1 + $0x30] sm:$0xff]  ;;  %s1739_s28 = smov (!%p333_p3, %s1439_s28), 1  ;;  %v445_v23 = vld [vmem:[%s1723_s1 + $0x48] sm:$0xff] }
  0x2e   : > { %v573_v15 = vcombine.high %v571_v13, %v571_v13  ;;  %v444_v24 = vld [vmem:[%s1723_s1 + $0x40] sm:$0xff]  ;;  %s1281_s20 = smul.u32 72, %s1739_s28  ;;  %v447_v25 = vld [vmem:[%s1723_s1 + $0x58] sm:$0xff]  ;;  %v446_v26 = vld [vmem:[%s1723_s1 + $0x50] sm:$0xff]  ;;  %s1213_s24 = sshll.u32 %s1739_s28, 5 }
  0x2f   : > { %v579_v10 = vsub.s32 %v576_v6, %v578_v7  ;;  %v449_v27 = vld [vmem:[%s1723_s1 + $0x68] sm:$0xff]  ;;  %v448_v28 = vld [vmem:[%s1723_s1 + $0x60] sm:$0xff]  ;;  %v451_v35 = vld [vmem:[%s1723_s1 + $0x78] sm:$0xff]  ;;  %s345_s10 = scalar_lea.vmem %s1729_s7, %s1739_s28  ;;  %s348_s13 = scalar_lea.vmem %s1730_s8, %s1739_s28 }
  0x30   : > { %s1536_s29 = scalar_lea.vmem %s1722_s0, %s1281_s20  ;;  %v1548_v32 = vld [vmem:[%s1724_s2] ss:$0 sm:$0xff]  ;;  %v450_v36 = vld [vmem:[%s1723_s1 + $0x70] sm:$0xff]  ;;  %v453_v40 = vld [vmem:[%s1723_s1 + $0x88] sm:$0xff] }
  0x31   : > { %471 = vperm.xlu1 %1314, %v439_v8   ;;  %461 = vperm.xlu0 %1313, %v437_v9   ;;  %v580_v14 = vrot.slane %v571_v13, %v579_v10  ;;  %v587_v19 = vrot.slane %v573_v15, %v579_v10  ;;  %v1277_v29 = vld [vmem:[%s1536_s29 + $0x40] sm:$0xff]   ;;  %v1270_v45 = vld [vmem:[%s1536_s29 + $0x8] sm:$0xff]   ;;  %v1271_v56 = vld [vmem:[%s1536_s29 + $0x10] sm:$0xff]  }
  0x32   : > { %v1249_v30 = vunpack.c.h.bf16 %v1277_v29  ;;  %v1248_v31 = vunpack.c.l.bf16 %v1277_v29  ;;  %v1561_v37 = vld [vmem:[%s1725_s3] ss:$0 sm:$0xff]  ;;  %v1220_v48 = vunpack.c.l.bf16 %v1270_v45  ;;  %v1221_v49 = vunpack.c.h.bf16 %v1270_v45  ;;  %v1272_v10 = vld [vmem:[%s1536_s29 + $0x18] sm:$0xff]  }
  0x33   : > { %v588_v18 = vcombine.high %v580_v14, %v580_v14  ;;  %v620_v20 = vsel %vm618_vm0, %v580_v14, 0  ;;  %v589_v21 = vcombine.high %v587_v19, %v587_v19  ;;  %v626_v22 = vsel %vm618_vm0, %v587_v19, 0  ;;  %v452_v41 = vld [vmem:[%s1723_s1 + $0x80] sm:$0xff] }
  0x34   : > { %v410_v33 = vmul.f32 %v1249_v30, %v1548_v32  ;;  %v409_v34 = vmul.f32 %v1248_v31, %v1548_v32  ;;  %v1215_v42 = vld [vmem:[%s1536_s29] sm:$0xff]   ;;  %v395_v54 = vmul.f32 %v1220_v48, %v1548_v32  ;;  %v396_v55 = vmul.f32 %v1221_v49, %v1548_v32 }
  0x35   : > { %481 = vperm.xlu1 %1314, %v441_v11   ;;  %476 = vperm.xlu0 %1313, %v440_v12   ;;  %v1216_v43 = vunpack.c.l.bf16 %v1215_v42  ;;  %v1217_v44 = vunpack.c.h.bf16 %v1215_v42  ;;  %v1225_v61 = vunpack.c.h.bf16 %v1271_v56  ;;  %v1224_v2 = vunpack.c.l.bf16 %v1271_v56 }
  0x36   : > { %1190 = vmatprep.subr.msk.bf16.mxu0 %vm618_vm0, %v588_v18  ;;  %1200 = vmatprep.subr.msk.bf16.mxu1 %vm618_vm0, %v589_v21  ;;  %v1564_v38 = vadd.f32 %v1561_v37, %v410_v33  ;;  %v1567_v39 = vadd.f32 %v1561_v37, %v409_v34  ;;  %v420_v62 = vadd.f32 %v1561_v37, %v395_v54  ;;  %v1229_v15 = vunpack.c.h.bf16 %v1272_v10 }
  0x37   : > { %646 = vmatpush1.bf16.msra.mxu0 %v620_v20  ;;  %757 = vmatpush1.bf16.msra.mxu1 %v626_v22  ;;  %v393_v46 = vmul.f32 %v1216_v43, %v1548_v32  ;;  %v394_v47 = vmul.f32 %v1217_v44, %v1548_v32  ;;  %v421_v63 = vadd.f32 %v1561_v37, %v396_v55 }
  0x38   : > { %v398_v5 = vmul.f32 %v1225_v61, %v1548_v32  ;;  %v397_v8 = vmul.f32 %v1224_v2, %v1548_v32  ;;  %v400_v21 = vmul.f32 %v1229_v15, %v1548_v32 }
  0x39   : > { %491 = vperm.xlu1 %1314, %v443_v16   ;;  %486 = vperm.xlu0 %1313, %v442_v17   ;;  %v418_v52 = vadd.f32 %v1561_v37, %v393_v46  ;;  %v419_v53 = vadd.f32 %v1561_v37, %v394_v47  ;;  %v1228_v16 = vunpack.c.l.bf16 %v1272_v10 }
  0x3a   : > { %v423_v12 = vadd.f32 %v1561_v37, %v398_v5  ;;  %v422_v14 = vadd.f32 %v1561_v37, %v397_v8 }
  0x3b   : > { %v399_v22 = vmul.f32 %v1228_v16, %v1548_v32 }
  0x3d   : > { %501 = vperm.xlu1 %1314, %v445_v23   ;;  %496 = vperm.xlu0 %1313, %v444_v24   ;;  %v1273_v23 = vld [vmem:[%s1536_s29 + $0x20] sm:$0xff]   ;;  %v424_v29 = vadd.f32 %v1561_v37, %v399_v22 }
  0x3e   : > { %v1232_v30 = vunpack.c.l.bf16 %v1273_v23 }
  0x41   : > { %511 = vperm.xlu1 %1314, %v447_v25   ;;  %506 = vperm.xlu0 %1313, %v446_v26   ;;  %v1233_v26 = vunpack.c.h.bf16 %v1273_v23 }
  0x45   : > { %521 = vperm.xlu1 %1314, %v449_v27   ;;  %516 = vperm.xlu0 %1313, %v448_v28   ;;  %v425_v28 = vadd.f32 %v1561_v37, %v400_v21 }
  0x49   : > { %531 = vperm.xlu1 %1314, %v451_v35   ;;  %526 = vperm.xlu0 %1313, %v450_v36   ;;  %v402_v36 = vmul.f32 %v1233_v26, %v1548_v32 }
  0x4b   : > { %v427_v46 = vadd.f32 %v1561_v37, %v402_v36 }
  0x4d   : > { %541 = vperm.xlu1 %1314, %v453_v40   ;;  %536 = vperm.xlu0 %1313, %v452_v41   ;;  %v401_v40 = vmul.f32 %v1232_v30, %v1548_v32  ;;  %v1274_v41 = vld [vmem:[%s1536_s29 + $0x28] sm:$0xff]  }
  0x4e   : > { %v1237_v44 = vunpack.c.h.bf16 %v1274_v41  ;;  %v1236_v48 = vunpack.c.l.bf16 %v1274_v41 }
  0x4f   : > { %v426_v47 = vadd.f32 %v1561_v37, %v401_v40 }
  0x50   : > { %v403_v56 = vmul.f32 %v1236_v48, %v1548_v32 }
  0xa8   : > { %v467_v50 = vpop.permute.xlu1 %466  ;;  %v457_v51 = vpop.permute.xlu0 %456 }
  0xa9   : > { %v544_v59 = vmul.f32 %v457_v51, %v418_v52  ;;  %v546_v6 = vmul.f32 %v467_v50, %v420_v62 }
  0xac   : > { %v472_v57 = vpop.permute.xlu1 %471  ;;  %v462_v58 = vpop.permute.xlu0 %461 }
  0xad   : > { %v545_v60 = vmul.f32 %v462_v58, %v419_v53  ;;  %v547_v7 = vmul.f32 %v472_v57, %v421_v63  ;;  %v404_v53 = vmul.f32 %v1237_v44, %v1548_v32  ;;  %v1275_v57 = vld [vmem:[%s1536_s29 + $0x30] sm:$0xff]  }
  0xae   : > { %v1240_v61 = vunpack.c.l.bf16 %v1275_v57 }
  0xaf   : > { %v562_v1 = vpack.c.bf16 %v545_v60, %v544_v59  ;;  %v563_v13 = vpack.c.bf16 %v547_v7, %v546_v6  ;;  %v428_v60 = vadd.f32 %v1561_v37, %v403_v56 }
  0xb0   : > { %v482_v3 = vpop.permute.xlu1 %481  ;;  %v477_v4 = vpop.permute.xlu0 %476  ;;  %v405_v2 = vmul.f32 %v1240_v61, %v1548_v32 }
  0xb1   : > { %1191 = vmatmul.mubr.msk.bf16.vlgmr.msra.gmra.mxu0 %vm590_vm1, %v562_v1  ;;  %1201 = vmatmul.mubr.msk.bf16.vlgmr.msra.gmra.mxu1 %vm590_vm1, %v562_v1  ;;  %v549_v19 = vmul.f32 %v482_v3, %v423_v12  ;;  %v548_v20 = vmul.f32 %v477_v4, %v422_v14  ;;  %v1276_v3 = vld [vmem:[%s1536_s29 + $0x38] sm:$0xff]   ;;  %s1668_s29 = scalar_lea.vmem %s1728_s6, %s1213_s24 }
  0xb2   : > { %672 = vmatprep.mubr.bf16.mxu0 %v1386_v0  ;;  %780 = vmatprep.mubr.bf16.mxu1 %v1386_v0  ;;  %v430_v6 = vadd.f32 %v1561_v37, %v405_v2  ;;  %v1245_v7 = vunpack.c.h.bf16 %v1276_v3  ;;  %v1244_v8 = vunpack.c.l.bf16 %v1276_v3 }
  0xb3   : > { %v564_v27 = vpack.c.bf16 %v549_v19, %v548_v20 }
  0xb4   : > { %v492_v9 = vpop.permute.xlu1 %491  ;;  %v487_v11 = vpop.permute.xlu0 %486  ;;  %v407_v12 = vmul.f32 %v1244_v8, %v1548_v32 }
  0xb5   : > { %v551_v34 = vmul.f32 %v492_v9, %v425_v28  ;;  %v550_v35 = vmul.f32 %v487_v11, %v424_v29  ;;  %v408_v11 = vmul.f32 %v1245_v7, %v1548_v32 }
  0xb6   : > { %v432_v15 = vadd.f32 %v1561_v37, %v407_v12 }
  0xb7   : > { %v565_v45 = vpack.c.bf16 %v551_v34, %v550_v35  ;;  %v433_v14 = vadd.f32 %v1561_v37, %v408_v11 }
  0xb8   : > { %v502_v17 = vpop.permute.xlu1 %501  ;;  %v497_v18 = vpop.permute.xlu0 %496 }
  0xb9   : > { %1192 = vmatmul.mubr.msk.bf16.gmra.mxu0 %vm590_vm1, %v563_v13  ;;  %1202 = vmatmul.mubr.msk.bf16.gmra.mxu1 %vm590_vm1, %v563_v13  ;;  %v553_v54 = vmul.f32 %v502_v17, %v427_v46  ;;  %v552_v55 = vmul.f32 %v497_v18, %v426_v47 }
  0xba   : > { %681 = vmatprep.mubr.bf16.mxu0 %v1386_v0  ;;  %789 = vmatprep.mubr.bf16.mxu1 %v1386_v0 }
  0xbb   : > { %v566_v59 = vpack.c.bf16 %v553_v54, %v552_v55 }
  0xbc   : > { %v512_v24 = vpop.permute.xlu1 %511  ;;  %v507_v25 = vpop.permute.xlu0 %506 }
  0xbd   : > { %v554_v1 = vmul.f32 %v507_v25, %v428_v60 }
  0xc0   : > { %v522_v31 = vpop.permute.xlu1 %521  ;;  %v517_v33 = vpop.permute.xlu0 %516 }
  0xc1   : > { %1193 = vmatmul.mubr.msk.bf16.gmra.mxu0 %vm590_vm1, %v564_v27  ;;  %1203 = vmatmul.mubr.msk.bf16.gmra.mxu1 %vm590_vm1, %v564_v27  ;;  %v556_v10 = vmul.f32 %v517_v33, %v430_v6 }
  0xc2   : > { %690 = vmatprep.mubr.bf16.mxu0 %v1386_v0  ;;  %798 = vmatprep.mubr.bf16.mxu1 %v1386_v0 }
  0xc4   : > { %v532_v42 = vpop.permute.xlu1 %531  ;;  %v527_v43 = vpop.permute.xlu0 %526 }
  0xc5   : > { %v559_v16 = vmul.f32 %v532_v42, %v433_v14  ;;  %v558_v17 = vmul.f32 %v527_v43, %v432_v15 }
  0xc7   : > { %v569_v18 = vpack.c.bf16 %v559_v16, %v558_v17 }
  0xc8   : > { %v542_v49 = vpop.permute.xlu1 %541  ;;  %v537_v50 = vpop.permute.xlu0 %536 }
  0xc9   : > { %v561_v51 = vmul.f32 %v542_v49, %v1564_v38  ;;  %v560_v52 = vmul.f32 %v537_v50, %v1567_v39  ;;  %1194 = vmatmul.mubr.msk.bf16.gmra.mxu0 %vm590_vm1, %v565_v45  ;;  %1204 = vmatmul.mubr.msk.bf16.gmra.mxu1 %vm590_vm1, %v565_v45  ;;  %v1241_v38 = vunpack.c.h.bf16 %v1275_v57  ;;  %v429_v39 = vadd.f32 %v1561_v37, %v404_v53  ;;  %v1654_v57 = vld [vmem:[#allocation4] ss:$0 sm:$0xff] }
  0xca   : > { %699 = vmatprep.mubr.bf16.mxu0 %v1386_v0  ;;  %807 = vmatprep.mubr.bf16.mxu1 %v1386_v0 }
  0xcb   : > { %v570_v58 = vpack.c.bf16 %v561_v51, %v560_v52  ;;  %v406_v62 = vmul.f32 %v1241_v38, %v1548_v32  ;;  %v555_v63 = vmul.f32 %v512_v24, %v429_v39 }
  0xcd   : > { %v431_v4 = vadd.f32 %v1561_v37, %v406_v62  ;;  %v567_v5 = vpack.c.bf16 %v555_v63, %v554_v1 }
  0xcf   : > { %v557_v9 = vmul.f32 %v522_v31, %v431_v4 }
  0xd1   : > { %1195 = vmatmul.mubr.msk.bf16.gmra.mxu0 %vm590_vm1, %v566_v59  ;;  %1205 = vmatmul.mubr.msk.bf16.gmra.mxu1 %vm590_vm1, %v566_v59  ;;  %v568_v13 = vpack.c.bf16 %v557_v9, %v556_v10 }
  0xd2   : > { %708 = vmatprep.mubr.bf16.mxu0 %v1386_v0  ;;  %816 = vmatprep.mubr.bf16.mxu1 %v1386_v0 }
  0xd9   : > { %1196 = vmatmul.mubr.msk.bf16.gmra.mxu0 %vm590_vm1, %v567_v5  ;;  %1206 = vmatmul.mubr.msk.bf16.gmra.mxu1 %vm590_vm1, %v567_v5 }
  0xda   : > { %717 = vmatprep.mubr.bf16.mxu0 %v1386_v0  ;;  %825 = vmatprep.mubr.bf16.mxu1 %v1386_v0 }
  0xe1   : > { %1197 = vmatmul.mubr.msk.bf16.gmra.mxu0 %vm590_vm1, %v568_v13  ;;  %1207 = vmatmul.mubr.msk.bf16.gmra.mxu1 %vm590_vm1, %v568_v13 }
  0xe2   : > { %726 = vmatprep.mubr.bf16.mxu0 %v1386_v0  ;;  %834 = vmatprep.mubr.bf16.mxu1 %v1386_v0 }
  0xe9   : > { %1198 = vmatmul.mubr.msk.bf16.gmra.mxu0 %vm590_vm1, %v569_v18  ;;  %1208 = vmatmul.mubr.msk.bf16.gmra.mxu1 %vm590_vm1, %v569_v18 }
  0xea   : > { %735 = vmatprep.mubr.bf16.mxu0 %v1386_v0  ;;  %843 = vmatprep.mubr.bf16.mxu1 %v1386_v0 }
  0xf1   : > { %1199 = vmatmul.mubr.msk.bf16.gmra.mxu0 %vm590_vm1, %v570_v58  ;;  %1209 = vmatmul.mubr.msk.bf16.gmra.mxu1 %vm590_vm1, %v570_v58 }
 0x171   : > { %v665_v32 = vpop.f32.mrf.mxu0  ;;  %v776_v37 = vpop.f32.mrf.mxu1 }
 0x173   : > { %v667_v19 = vpop.f32.mrf.mxu0  ;;  %v777_v20 = vpop.f32.mrf.mxu1 }
 0x174   : > { %v870_v30 = vrot.slane %v667_v19, 1 }
 0x175   : > { %v669_v21 = vpop.f32.mrf.mxu0  ;;  %v778_v22 = vpop.f32.mrf.mxu1 }
 0x177   : > { %v670_v23 = vpop.f32.mrf.mxu0  ;;  %v779_v24 = vpop.f32.mrf.mxu1 }
 0x178   : > { %v871_v27 = vrot.slane %v670_v23, 1 }
 0x179   : > { %v674_v25 = vpop.f32.mrf.mxu0  ;;  %v782_v26 = vpop.f32.mrf.mxu1 }
 0x17a   : > { %v872_v33 = vsel %vm869_vm2, %v870_v30, %v871_v27 }
 0x17b   : > { %v676_v28 = vpop.f32.mrf.mxu0  ;;  %v784_v29 = vpop.f32.mrf.mxu1  ;;  %v902_v42 = vadd.f32 %v872_v33, %v665_v32 }
 0x17c   : > { %v873_v36 = vrot.slane %v676_v28, 1  ;;  %v934_v45 = vrot.slane %v784_v29, 1 }
 0x17d   : > { %v678_v0 = vpop.f32.mrf.mxu0  ;;  %v786_v31 = vpop.f32.mrf.mxu1  ;;  %v910_v50 = vadd.f32 %v902_v42, %v782_v26 }
 0x17f   : > { %v679_v34 = vpop.f32.mrf.mxu0  ;;  %v787_v35 = vpop.f32.mrf.mxu1 }
 0x180   : > { %v874_v40 = vrot.slane %v679_v34, 1  ;;  %v935_v41 = vrot.slane %v787_v35, 1 }
 0x181   : > { %v683_v43 = vpop.f32.mrf.mxu0  ;;  %v791_v44 = vpop.f32.mrf.mxu1 }
 0x182   : > { %v875_v46 = vsel %vm869_vm2, %v873_v36, %v874_v40  ;;  %v936_v49 = vsel %vm869_vm2, %v934_v45, %v935_v41 }
 0x183   : > { %v685_v47 = vpop.f32.mrf.mxu0  ;;  %v793_v48 = vpop.f32.mrf.mxu1  ;;  %v903_v51 = vadd.f32 %v875_v46, %v674_v25  ;;  %v966_v54 = vadd.f32 %v936_v49, %v910_v50 }
 0x184   : > { %v937_v58 = vrot.slane %v793_v48, 1  ;;  %v876_v4 = vrot.slane %v685_v47, 1 }
 0x185   : > { %v687_v52 = vpop.f32.mrf.mxu0  ;;  %v795_v53 = vpop.f32.mrf.mxu1  ;;  %v911_v59 = vadd.f32 %v903_v51, %v791_v44  ;;  %v981_v63 = vadd.f32 %v1654_v57, %v966_v54 }
 0x187   : > { %v688_v55 = vpop.f32.mrf.mxu0  ;;  %v796_v56 = vpop.f32.mrf.mxu1  ;;  %v1661_v9 = vmax.f32 %v981_v63, 0.0 }
 0x188   : > { %v938_v38 = vrot.slane %v796_v56, 1  ;;  %v877_v61 = vrot.slane %v688_v55, 1 }
 0x189   : > { %v692_v39 = vpop.f32.mrf.mxu0  ;;  %v800_v60 = vpop.f32.mrf.mxu1 }
 0x18a   : > { %v939_v62 = vsel %vm869_vm2, %v937_v58, %v938_v38  ;;  %v878_v8 = vsel %vm869_vm2, %v876_v4, %v877_v61 }
 0x18b   : > { %v967_v1 = vadd.f32 %v939_v62, %v911_v59  ;;  %v694_v2 = vpop.f32.mrf.mxu0  ;;  %v802_v3 = vpop.f32.mrf.mxu1  ;;  %v904_v17 = vadd.f32 %v878_v8, %v683_v43 }
 0x18c   : > { %v879_v13 = vrot.slane %v694_v2, 1  ;;  %v940_v37 = vrot.slane %v802_v3, 1 }
 0x18d   : > { %v982_v5 = vadd.f32 %v1654_v57, %v967_v1  ;;  %v696_v6 = vpop.f32.mrf.mxu0  ;;  %v804_v7 = vpop.f32.mrf.mxu1  ;;  %v912_v23 = vadd.f32 %v904_v17, %v800_v60 }
 0x18f   : > { %v1663_v10 = vmax.f32 %v982_v5, 0.0  ;;  %v697_v11 = vpop.f32.mrf.mxu0  ;;  %v805_v12 = vpop.f32.mrf.mxu1 }
 0x190   : > { %v880_v14 = vrot.slane %v697_v11, 1  ;;  %v941_v15 = vrot.slane %v805_v12, 1 }
 0x191   : > { %v1253_v16 = vpack.c.bf16 %v1663_v10, %v1661_v9  ;;  %v701_v18 = vpop.f32.mrf.mxu0  ;;  %v809_v32 = vpop.f32.mrf.mxu1 }
 0x192   : > { %v881_v19 = vsel %vm869_vm2, %v879_v13, %v880_v14  ;;  %v942_v22 = vsel %vm869_vm2, %v940_v37, %v941_v15 }
 0x193   : > { %1254 = vst [vmem:[%s1668_s29] sm:$0xff] %v1253_v16   ;;  %v703_v20 = vpop.f32.mrf.mxu0  ;;  %v811_v21 = vpop.f32.mrf.mxu1  ;;  %v905_v24 = vadd.f32 %v881_v19, %v692_v39  ;;  %v968_v27 = vadd.f32 %v942_v22, %v912_v23 }
 0x194   : > { %v943_v30 = vrot.slane %v811_v21, 1  ;;  %v882_v44 = vrot.slane %v703_v20, 1 }
 0x195   : > { %v705_v25 = vpop.f32.mrf.mxu0  ;;  %v813_v26 = vpop.f32.mrf.mxu1  ;;  %v913_v31 = vadd.f32 %v905_v24, %v809_v32  ;;  %v983_v40 = vadd.f32 %v1654_v57, %v968_v27 }
 0x197   : > { %v706_v28 = vpop.f32.mrf.mxu0  ;;  %v814_v29 = vpop.f32.mrf.mxu1  ;;  %v1679_v49 = vmax.f32 %v983_v40, 0.0  ;;  %v1028_v40 = vmul.f32 %v1663_v10, %v1663_v10 }
 0x198   : > { %v944_v0 = vrot.slane %v814_v29, 1  ;;  %v883_v35 = vrot.slane %v706_v28, 1 }
 0x199   : > { %v710_v33 = vpop.f32.mrf.mxu0  ;;  %v818_v34 = vpop.f32.mrf.mxu1 }
 0x19a   : > { %v945_v36 = vsel %vm869_vm2, %v943_v30, %v944_v0  ;;  %v884_v48 = vsel %vm869_vm2, %v882_v44, %v883_v35 }
 0x19b   : > { %v969_v41 = vadd.f32 %v945_v36, %v913_v31  ;;  %v712_v42 = vpop.f32.mrf.mxu0  ;;  %v820_v43 = vpop.f32.mrf.mxu1  ;;  %v906_v58 = vadd.f32 %v884_v48, %v701_v18  ;;  %v1013_v48 = vadd.f32 %v1663_v10, %v1661_v9 }
 0x19c   : > { %v885_v53 = vrot.slane %v712_v42, 1  ;;  %v946_v39 = vrot.slane %v820_v43, 1 }
 0x19d   : > { %v984_v45 = vadd.f32 %v1654_v57, %v969_v41  ;;  %v714_v46 = vpop.f32.mrf.mxu0  ;;  %v822_v47 = vpop.f32.mrf.mxu1  ;;  %v914_v1 = vadd.f32 %v906_v58, %v818_v34 }
 0x19e   : > { %v1027_v46 = vmul.f32 %v1661_v9, %v1661_v9  ;;  %v1029_v47 = vmul.f32 %v1679_v49, %v1679_v49 }
 0x19f   : > { %v1681_v50 = vmax.f32 %v984_v45, 0.0  ;;  %v715_v51 = vpop.f32.mrf.mxu0  ;;  %v823_v52 = vpop.f32.mrf.mxu1 }
 0x1a0   : > { %v886_v54 = vrot.slane %v715_v51, 1  ;;  %v947_v55 = vrot.slane %v823_v52, 1 }
 0x1a1   : > { %v1258_v56 = vpack.c.bf16 %v1681_v50, %v1679_v49  ;;  %v719_v38 = vpop.f32.mrf.mxu0  ;;  %v827_v59 = vpop.f32.mrf.mxu1  ;;  %v1030_v58 = vmul.f32 %v1681_v50, %v1681_v50 }
 0x1a2   : > { %v887_v60 = vsel %vm869_vm2, %v885_v53, %v886_v54  ;;  %v948_v63 = vsel %vm869_vm2, %v946_v39, %v947_v55  ;;  %v1035_v55 = vadd.f32 %v1028_v40, %v1027_v46 }
 0x1a3   : > { %1278 = vst [vmem:[%s1668_s29 + $0x8] sm:$0xff] %v1258_v56   ;;  %v721_v61 = vpop.f32.mrf.mxu0  ;;  %v829_v62 = vpop.f32.mrf.mxu1  ;;  %v907_v2 = vadd.f32 %v887_v60, %v710_v33  ;;  %v970_v5 = vadd.f32 %v948_v63, %v914_v1  ;;  %v1014_v56 = vadd.f32 %v1013_v48, %v1679_v49 }
 0x1a4   : > { %v888_v8 = vrot.slane %v721_v61, 1  ;;  %v949_v11 = vrot.slane %v829_v62, 1  ;;  %v1036_v39 = vadd.f32 %v1035_v55, %v1029_v47 }
 0x1a5   : > { %v723_v3 = vpop.f32.mrf.mxu0  ;;  %v831_v4 = vpop.f32.mrf.mxu1  ;;  %v915_v14 = vadd.f32 %v907_v2, %v827_v59  ;;  %v985_v32 = vadd.f32 %v1654_v57, %v970_v5  ;;  %v1015_v62 = vadd.f32 %v1014_v56, %v1681_v50 }
 0x1a6   : > { %v1037_v2 = vadd.f32 %v1036_v39, %v1030_v58 }
 0x1a7   : > { %v724_v6 = vpop.f32.mrf.mxu0  ;;  %v832_v7 = vpop.f32.mrf.mxu1  ;;  %v993_v25 = vmax.f32 %v985_v32, 0.0 }
 0x1a8   : > { %v889_v12 = vrot.slane %v724_v6, 1  ;;  %v950_v13 = vrot.slane %v832_v7, 1 }
 0x1a9   : > { %v728_v15 = vpop.f32.mrf.mxu0  ;;  %v836_v16 = vpop.f32.mrf.mxu1  ;;  %v1031_v63 = vmul.f32 %v993_v25, %v993_v25  ;;  %v1016_v3 = vadd.f32 %v1015_v62, %v993_v25 }
 0x1aa   : > { %v951_v17 = vsel %vm869_vm2, %v949_v11, %v950_v13  ;;  %v890_v18 = vsel %vm869_vm2, %v888_v8, %v889_v12 }
 0x1ab   : > { %v971_v37 = vadd.f32 %v951_v17, %v915_v14  ;;  %v730_v19 = vpop.f32.mrf.mxu0  ;;  %v838_v20 = vpop.f32.mrf.mxu1  ;;  %v908_v22 = vadd.f32 %v890_v18, %v719_v38  ;;  %v1038_v5 = vadd.f32 %v1037_v2, %v1031_v63 }
 0x1ac   : > { %v891_v29 = vrot.slane %v730_v19, 1  ;;  %v952_v30 = vrot.slane %v838_v20, 1 }
 0x1ad   : > { %v986_v21 = vadd.f32 %v1654_v57, %v971_v37  ;;  %v732_v23 = vpop.f32.mrf.mxu0  ;;  %v840_v24 = vpop.f32.mrf.mxu1  ;;  %v916_v34 = vadd.f32 %v908_v22, %v836_v16 }
 0x1af   : > { %v994_v26 = vmax.f32 %v986_v21, 0.0  ;;  %v733_v27 = vpop.f32.mrf.mxu0  ;;  %v841_v28 = vpop.f32.mrf.mxu1 }
 0x1b0   : > { %v892_v0 = vrot.slane %v733_v27, 1  ;;  %v953_v31 = vrot.slane %v841_v28, 1 }
 0x1b1   : > { %v1263_v33 = vpack.c.bf16 %v994_v26, %v993_v25  ;;  %v737_v35 = vpop.f32.mrf.mxu0  ;;  %v845_v36 = vpop.f32.mrf.mxu1  ;;  %v1032_v4 = vmul.f32 %v994_v26, %v994_v26  ;;  %v1017_v6 = vadd.f32 %v1016_v3, %v994_v26 }
 0x1b2   : > { %v954_v41 = vsel %vm869_vm2, %v952_v30, %v953_v31  ;;  %v893_v42 = vsel %vm869_vm2, %v891_v29, %v892_v0 }
 0x1b3   : > { %1279 = vst [vmem:[%s1668_s29 + $0x10] sm:$0xff] %v1263_v33   ;;  %v972_v43 = vadd.f32 %v954_v41, %v916_v34  ;;  %v738_v44 = vpop.f32.mrf.mxu0  ;;  %v847_v45 = vpop.f32.mrf.mxu1  ;;  %v909_v52 = vadd.f32 %v893_v42, %v728_v15  ;;  %v1039_v11 = vadd.f32 %v1038_v5, %v1032_v4 }
 0x1b4   : > { %v955_v60 = vrot.slane %v847_v45, 1 }
 0x1b5   : > { %v987_v51 = vadd.f32 %v1654_v57, %v972_v43  ;;  %v739_v53 = vpop.f32.mrf.mxu0  ;;  %v849_v54 = vpop.f32.mrf.mxu1  ;;  %v917_v10 = vadd.f32 %v909_v52, %v845_v36 }
 0x1b7   : > { %v740_v38 = vpop.f32.mrf.mxu0  ;;  %v850_v59 = vpop.f32.mrf.mxu1  ;;  %v995_v9 = vmax.f32 %v987_v51, 0.0 }
 0x1b8   : > { %v956_v61 = vrot.slane %v850_v59, 1 }
 0x1b9   : > { %v1033_v7 = vmul.f32 %v995_v9, %v995_v9  ;;  %v1018_v12 = vadd.f32 %v1017_v6, %v995_v9 }
 0x1ba   : > { %v957_v1 = vsel %vm869_vm2, %v955_v60, %v956_v61 }
 0x1bb   : > { %v973_v49 = vadd.f32 %v957_v1, %v917_v10  ;;  %v1040_v50 = vadd.f32 %v1039_v11, %v1033_v7 }
 0x1bd   : > { %v988_v8 = vadd.f32 %v1654_v57, %v973_v49 }
 0x1bf   : > { %v996_v13 = vmax.f32 %v988_v8, 0.0 }
 0x1c1   : > { %v1268_v14 = vpack.c.bf16 %v996_v13, %v995_v9  ;;  %v1019_v15 = vadd.f32 %v1018_v12, %v996_v13  ;;  %v1034_v16 = vmul.f32 %v996_v13, %v996_v13 }
 0x1c3   : > { %1280 = vst [vmem:[%s1668_s29 + $0x18] sm:$0xff] %v1268_v14   ;;  %v1020_v17 = vrot.slane %v1019_v15, 4  ;;  %v1041_v18 = vadd.f32 %v1040_v50, %v1034_v16 }
 0x1c5   : > { %v1021_v32 = vadd.f32 %v1020_v17, %v1019_v15  ;;  %v1042_v37 = vrot.slane %v1041_v18, 4 }
 0x1c7   : > { %v1022_v19 = vrot.slane %v1021_v32, 2  ;;  %v1043_v20 = vadd.f32 %v1042_v37, %v1041_v18 }
 0x1c9   : > { %v1023_v21 = vadd.f32 %v1022_v19, %v1021_v32  ;;  %v1044_v22 = vrot.slane %v1043_v20, 2 }
 0x1cb   : > { %v1024_v23 = vrot.slane %v1023_v21, 1  ;;  %v1045_v57 = vadd.f32 %v1044_v22, %v1043_v20 }
 0x1cd   : > { %v1025_v24 = vadd.f32 %v1024_v23, %v1023_v21  ;;  %v1046_v25 = vrot.slane %v1045_v57, 1 }
 0x1cf   : > { %1026 = vst [vmem:[%s345_s10] sm:$0x1] %v1025_v24  ;;  %v1047_v26 = vadd.f32 %v1046_v25, %v1045_v57 }
 0x1d1   : > { %1048 = vst [vmem:[%s348_s13] sm:$0x1] %v1047_v26 }
 0x1d2 PF: > { %s21_s27 = sadd.s32 1, %s1382_s27  }
 0x1d3   : > { %p18_p5 = scmp.ge.s32.totalorder %s21_s27, 4  }
 0x1d5   :  { %20 = sbr.rel (!%p18_p5) target bundleno = 2 (0x2), region = 107 }
 0x1da   :  { %1094 = vsyncpa [#allocation3], 1 }
 0x1db   :  { %1096 = vsyncpa [#allocation3 + $0x1], 1 }
 0x1dc   :  { %1097 = vsyncpa [#allocation5], 1 }

// kernel: encoder_forward.5
= control target key start
LH: loop header
LB: loop body
LE: loop exit
PB: predicated region body
PF: predicated region fallthrough
CT: control target
= control target key end

     0   :  { %v31_v20 = vlaneseq  ;;  %v2209_v27 = vmov 1983009808   ;;  %s2771_s3 = inlined_call_operand.vmem [shape: bf16[2048,128], index: 3, kind: input, shape index: {}]   ;;  %s2772_s0 = inlined_call_operand.vmem [shape: bf16[2,2048], index: 0, kind: input, shape index: {}]   ;;  %s2773_s1 = inlined_call_operand.vmem [shape: f32[1,2048], index: 1, kind: input, shape index: {}]   ;;  %s2774_s2 = inlined_call_operand.vmem [shape: f32[1,2048], index: 2, kind: input, shape index: {}]   ;;  %s2775_s4 = inlined_call_operand.vmem [shape: f32[1,128], index: 4, kind: input, shape index: {}]   ;;  %s2776_s5 = inlined_call_operand.vmem [shape: f32[2,128], index: 5, kind: output, shape index: {}]  }
   0x1   :  { %v2081_v0 = vld [vmem:[%s2771_s3 + $0x78] sm:$0xff]   ;;  %v2085_v4 = vld [vmem:[%s2771_s3 + $0x70] sm:$0xff]   ;;  %v2089_v8 = vld [vmem:[%s2771_s3 + $0x68] sm:$0xff]   ;;  %v98_v28 = vunpack.c.l.s4 %v2209_v27 }
   0x2   :  { %v2082_v1 = vld [vmem:[%s2771_s3 + $0xf8] sm:$0xff]   ;;  %1904 = vmatprep.subr.bf16.mxu0 %v2081_v0  ;;  %v2086_v5 = vld [vmem:[%s2771_s3 + $0xf0] sm:$0xff]   ;;  %v2090_v9 = vld [vmem:[%s2771_s3 + $0xe8] sm:$0xff]   ;;  %v32_v25 = vshrl.u32 %v31_v20, 7 }
   0x3   :  { %v2083_v2 = vld [vmem:[%s2771_s3 + $0x38] sm:$0xff]   ;;  %1926 = vmatprep.subr.bf16.mxu1 %v2082_v1  ;;  %v2087_v6 = vld [vmem:[%s2771_s3 + $0x30] sm:$0xff]   ;;  %v2091_v10 = vld [vmem:[%s2771_s3 + $0x28] sm:$0xff]   ;;  %v99_v35 = vunpack.c.0.s8 %v98_v28 }
   0x4   :  { %v2084_v3 = vld [vmem:[%s2771_s3 + $0xb8] sm:$0xff]   ;;  %1905 = vmatpush3.bf16.msra.mxu0 %v2083_v2  ;;  %v2088_v7 = vld [vmem:[%s2771_s3 + $0xb0] sm:$0xff]   ;;  %v2092_v11 = vld [vmem:[%s2771_s3 + $0xa8] sm:$0xff]   ;;  %v2324_v32 = vsub.s32 0, %v32_v25  ;;  %v2329_v34 = vsub.s32 1, %v32_v25  ;;  %v2334_v37 = vsub.s32 2, %v32_v25 }
   0x5   :  { %1927 = vmatpush3.bf16.msra.mxu1 %v2084_v3  ;;  %1906 = vmatprep.subr.bf16.mxu0 %v2085_v4  ;;  %v2093_v12 = vld [vmem:[%s2771_s3 + $0x60] sm:$0xff]   ;;  %v2097_v16 = vld [vmem:[%s2771_s3 + $0x58] sm:$0xff]   ;;  %v2101_v21 = vld [vmem:[%s2771_s3 + $0x50] sm:$0xff]   ;;  %v2339_v39 = vsub.s32 3, %v32_v25  ;;  %v2344_v41 = vsub.s32 4, %v32_v25  ;;  %v2352_v44 = vsub.s32 %v99_v35, %v32_v25  ;;  %v2354_v45 = vsub.s32 5, %v32_v25 }
   0x6   :  { %1928 = vmatprep.subr.bf16.mxu1 %v2086_v5  ;;  %v2094_v13 = vld [vmem:[%s2771_s3 + $0xe0] sm:$0xff]   ;;  %v2098_v17 = vld [vmem:[%s2771_s3 + $0xd8] sm:$0xff]   ;;  %v2102_v22 = vld [vmem:[%s2771_s3 + $0xd0] sm:$0xff]   ;;  %v2356_v46 = vsub.s32 6, %v32_v25  ;;  %v2363_v51 = vsub.s32 7, %v32_v25 }
   0x7   :  { %v2095_v14 = vld [vmem:[%s2771_s3 + $0x20] sm:$0xff]   ;;  %v2099_v18 = vld [vmem:[%s2771_s3 + $0x18] sm:$0xff]   ;;  %v2103_v23 = vld [vmem:[%s2771_s3 + $0x10] sm:$0xff]  }
   0x8   :  { %1907 = vmatpush3.bf16.msra.mxu0 %v2087_v6  ;;  %v2096_v15 = vld [vmem:[%s2771_s3 + $0xa0] sm:$0xff]   ;;  %v2100_v19 = vld [vmem:[%s2771_s3 + $0x98] sm:$0xff]   ;;  %v2104_v24 = vld [vmem:[%s2771_s3 + $0x90] sm:$0xff]  }
   0x9   :  { %1929 = vmatpush3.bf16.msra.mxu1 %v2088_v7  ;;  %1908 = vmatprep.subr.bf16.mxu0 %v2089_v8  ;;  %v2105_v26 = vld [vmem:[%s2771_s3 + $0x48] sm:$0xff]   ;;  %v2109_v33 = vld [vmem:[%s2771_s3 + $0x40] sm:$0xff]   ;;  %v2113_v56 = vld [vmem:[%s2771_s3 + $0x178] sm:$0xff]  }
   0xa   :  { %1930 = vmatprep.subr.bf16.mxu1 %v2090_v9  ;;  %v2106_v29 = vld [vmem:[%s2771_s3 + $0xc8] sm:$0xff]   ;;  %v2110_v36 = vld [vmem:[%s2771_s3 + $0xc0] sm:$0xff]   ;;  %v2114_v60 = vld [vmem:[%s2771_s3 + $0x1f8] sm:$0xff]  }
   0xb   :  { %v2107_v30 = vld [vmem:[%s2771_s3 + $0x8] sm:$0xff]   ;;  %v2111_v38 = vld [vmem:[%s2771_s3] sm:$0xff]  }
   0xc   :  { %1909 = vmatpush3.bf16.msra.mxu0 %v2091_v10  ;;  %v2108_v31 = vld [vmem:[%s2771_s3 + $0x88] sm:$0xff]   ;;  %v2112_v40 = vld [vmem:[%s2771_s3 + $0x80] sm:$0xff]  }
   0xd   :  { %1931 = vmatpush3.bf16.msra.mxu1 %v2092_v11  ;;  %1910 = vmatprep.subr.bf16.mxu0 %v2093_v12  ;;  %v21_v42 = vld [vmem:[%s2772_s0] sm:$0xff] }
   0xe   :  { %1932 = vmatprep.subr.bf16.mxu1 %v2094_v13  ;;  %v27_v43 = vld [vmem:[%s2773_s1] sm:$0xff]  ;;  %v23_v47 = vunpack.c.l.bf16 %v21_v42 }
   0xf   :  { %v34_v48 = vrot.slane %v27_v43, %v2324_v32  ;;  %v38_v49 = vrot.slane %v27_v43, %v2329_v34  ;;  %v171_v50 = vld [vmem:[%s2774_s2] sm:$0xff]  ;;  %v42_v52 = vrot.slane %v27_v43, %v2334_v37  ;;  %v46_v53 = vrot.slane %v27_v43, %v2339_v39 }
  0x10   :  { %1911 = vmatpush3.bf16.msra.mxu0 %v2095_v14  ;;  %v178_v54 = vrot.slane %v171_v50, %v2324_v32  ;;  %v182_v55 = vrot.slane %v171_v50, %v2329_v34  ;;  %v186_v58 = vrot.slane %v171_v50, %v2334_v37  ;;  %v190_v59 = vrot.slane %v171_v50, %v2339_v39 }
  0x11   :  { %1933 = vmatpush3.bf16.msra.mxu1 %v2096_v15  ;;  %1912 = vmatprep.subr.bf16.mxu0 %v2097_v16  ;;  %v95_v57 = vcombine.low %v34_v48, %v38_v49  ;;  %v50_v61 = vrot.slane %v27_v43, %v2344_v41  ;;  %v96_v62 = vcombine.low %v42_v52, %v46_v53 }
  0x12   :  { %1934 = vmatprep.subr.bf16.mxu1 %v2098_v17  ;;  %v239_v63 = vcombine.low %v178_v54, %v182_v55  ;;  %v54_v0 = vrot.slane %v27_v43, %v2354_v45  ;;  %v58_v1 = vrot.slane %v27_v43, %v2356_v46  ;;  %v240_v3 = vcombine.low %v186_v58, %v190_v59  ;;  %v2117_v59 = vld [vmem:[%s2771_s3 + $0x170] sm:$0xff]  }
  0x13   :  { %v103_v2 = vrot.slane %v95_v57, %v2352_v44  ;;  %v62_v4 = vrot.slane %v27_v43, %v2363_v51  ;;  %v194_v5 = vrot.slane %v171_v50, %v2344_v41  ;;  %v110_v6 = vrot.slane %v96_v62, %v2352_v44 }
  0x14   :  { %1913 = vmatpush3.bf16.msra.mxu0 %v2099_v18  ;;  %v247_v7 = vrot.slane %v239_v63, %v2352_v44  ;;  %v112_v8 = vcombine.low %v50_v61, %v54_v0  ;;  %v198_v9 = vrot.slane %v171_v50, %v2354_v45  ;;  %v254_v10 = vrot.slane %v240_v3, %v2352_v44  ;;  %v28_v18 = vld [vmem:[%s2773_s1 + $0x8] sm:$0xff] }
  0x15   :  { %1935 = vmatpush3.bf16.msra.mxu1 %v2100_v19  ;;  %1914 = vmatprep.subr.bf16.mxu0 %v2101_v21  ;;  %v113_v11 = vcombine.low %v58_v1, %v62_v4  ;;  %v202_v12 = vrot.slane %v171_v50, %v2356_v46  ;;  %v206_v13 = vrot.slane %v171_v50, %v2363_v51  ;;  %v24_v17 = vunpack.c.h.bf16 %v21_v42 }
  0x16   :  { %1936 = vmatprep.subr.bf16.mxu1 %v2102_v22  ;;  %v111_v14 = vcombine.low %v103_v2, %v110_v6  ;;  %v120_v15 = vrot.slane %v112_v8, %v2352_v44  ;;  %v256_v16 = vcombine.low %v194_v5, %v198_v9  ;;  %v255_v19 = vcombine.low %v247_v7, %v254_v10  ;;  %v2118_v2 = vld [vmem:[%s2771_s3 + $0x1f0] sm:$0xff]  }
  0x17   :  { %v127_v20 = vrot.slane %v113_v11, %v2352_v44  ;;  %v257_v21 = vcombine.low %v202_v12, %v206_v13  ;;  %v66_v27 = vrot.slane %v28_v18, %v2324_v32  ;;  %v70_v28 = vrot.slane %v28_v18, %v2329_v34  ;;  %v2119_v7 = vld [vmem:[%s2771_s3 + $0x130] sm:$0xff]   ;;  %v2121_v11 = vld [vmem:[%s2771_s3 + $0x168] sm:$0xff]  }
  0x18   :  { %1915 = vmatpush3.bf16.msra.mxu0 %v2103_v23  ;;  %v167_v22 = vmul.f32 %v111_v14, %v23_v47  ;;  %v264_v23 = vrot.slane %v256_v16, %v2352_v44  ;;  %v82_v58 = vrot.slane %v28_v18, %v2344_v41  ;;  %v86_v0 = vrot.slane %v28_v18, %v2354_v45 }
  0x19   :  { %1937 = vmatpush3.bf16.msra.mxu1 %v2104_v24  ;;  %1916 = vmatprep.subr.bf16.mxu0 %v2105_v26  ;;  %v128_v24 = vcombine.low %v120_v15, %v127_v20  ;;  %v271_v25 = vrot.slane %v257_v21, %v2352_v44  ;;  %v2407_v47 = vcombine.low %v66_v27, %v70_v28  ;;  %v2120_v15 = vld [vmem:[%s2771_s3 + $0x1b0] sm:$0xff]  }
  0x1a   :  { %1938 = vmatprep.subr.bf16.mxu1 %v2106_v29  ;;  %v311_v26 = vadd.f32 %v255_v19, %v167_v22  ;;  %v2401_v29 = vld [vmem:[%s2774_s2 + $0x8] sm:$0xff]  ;;  %v90_v1 = vrot.slane %v28_v18, %v2356_v46  ;;  %v94_v6 = vrot.slane %v28_v18, %v2363_v51  ;;  %v146_v9 = vcombine.low %v82_v58, %v86_v0  ;;  %v2134_v58 = vld [vmem:[%s2771_s3 + $0x1d0] sm:$0xff]  }
  0x1b   :  { %v210_v48 = vrot.slane %v2401_v29, %v2324_v32  ;;  %v214_v53 = vrot.slane %v2401_v29, %v2329_v34  ;;  %v218_v57 = vrot.slane %v2401_v29, %v2334_v37  ;;  %v222_v63 = vrot.slane %v2401_v29, %v2339_v39  ;;  %v2123_v22 = vld [vmem:[%s2771_s3 + $0x128] sm:$0xff]  }
  0x1c   :  { %1917 = vmatpush3.bf16.msra.mxu0 %v2107_v30  ;;  %v168_v30 = vmul.f32 %v128_v24, %v24_v17  ;;  %v319_v35 = vcombine.high %v311_v26, %v311_v26  ;;  %v137_v5 = vrot.slane %v2407_v47, %v2352_v44  ;;  %v226_v10 = vrot.slane %v2401_v29, %v2344_v41  ;;  %v2125_v24 = vld [vmem:[%s2771_s3 + $0x160] sm:$0xff]  }
  0x1d   :  { %1939 = vmatpush3.bf16.msra.mxu1 %v2108_v31  ;;  %1918 = vmatprep.subr.bf16.mxu0 %v2109_v33  ;;  %v272_v31 = vcombine.low %v264_v23, %v271_v25  ;;  %v326_v33 = vrot.slane %v311_v26, %v2352_v44  ;;  %v273_v8 = vcombine.low %v210_v48, %v214_v53  ;;  %v2130_v48 = vld [vmem:[%s2771_s3 + $0x1d8] sm:$0xff]   ;;  %v2133_v53 = vld [vmem:[%s2771_s3 + $0x150] sm:$0xff]  }
  0x1e   :  { %1940 = vmatprep.subr.bf16.mxu1 %v2110_v36  ;;  %v333_v43 = vrot.slane %v319_v35, %v2352_v44  ;;  %v147_v13 = vcombine.low %v90_v1, %v94_v6  ;;  %v230_v14 = vrot.slane %v2401_v29, %v2354_v45  ;;  %v274_v41 = vcombine.low %v218_v57, %v222_v63  ;;  %v2139_v63 = vld [vmem:[%s2771_s3 + $0x108] sm:$0xff]   ;;  %v2141_v1 = vld [vmem:[%s2771_s3 + $0x140] sm:$0xff]  }
  0x1f   :  { %v312_v36 = vadd.f32 %v272_v31, %v168_v30  ;;  %v334_v42 = vcombine.high %v326_v33, %v326_v33  ;;  %v403_v49 = vpack.c.bf16 %v326_v33, %v326_v33  ;;  %v154_v17 = vrot.slane %v146_v9, %v2352_v44  ;;  %v2126_v31 = vld [vmem:[%s2771_s3 + $0x1e0] sm:$0xff]   ;;  %v2146_v9 = vld [vmem:[%s2771_s3 + $0x2f8] sm:$0xff]  }
  0x20   :  { %1919 = vmatpush3.bf16.msra.mxu0 %v2111_v38  ;;  %v74_v38 = vrot.slane %v28_v18, %v2334_v37  ;;  %v335_v55 = vcombine.high %v333_v43, %v333_v43  ;;  %v405_v32 = vpack.c.bf16 %v333_v43, %v333_v43  ;;  %v2116_v37 = vld [vmem:[%s2771_s3 + $0x1b8] sm:$0xff]   ;;  %v161_v45 = vrot.slane %v147_v13, %v2352_v44  ;;  %v2149_v13 = vld [vmem:[%s2771_s3 + $0x270] sm:$0xff]  }
  0x21   :  { %1941 = vmatpush3.bf16.msra.mxu1 %v2112_v40  ;;  %1948 = vmatprep.subr.bf16.mxu0 %v2113_v56  ;;  %v78_v40 = vrot.slane %v28_v18, %v2339_v39  ;;  %v2412_v50 = vrot.slane %v312_v36, %v2352_v44  ;;  %v336_v52 = vcombine.high %v312_v36, %v312_v36  ;;  %v2115_v56 = vld [vmem:[%s2771_s3 + $0x138] sm:$0xff]   ;;  %v22_v39 = vld [vmem:[%s2772_s0 + $0x8] sm:$0xff]  ;;  %v2127_v36 = vld [vmem:[%s2771_s3 + $0x120] sm:$0xff]  }
  0x22   :  { %1970 = vmatprep.subr.bf16.mxu1 %v2114_v60  ;;  %v404_v54 = vpack.c.bf16 %v334_v42, %v334_v42  ;;  %v406_v62 = vpack.c.bf16 %v335_v55, %v335_v55  ;;  %v2122_v18 = vld [vmem:[%s2771_s3 + $0x1e8] sm:$0xff]   ;;  %v26_v19 = vunpack.c.h.bf16 %v22_v39  ;;  %v234_v20 = vrot.slane %v2401_v29, %v2356_v46  ;;  %v2128_v42 = vld [vmem:[%s2771_s3 + $0x1a0] sm:$0xff]  }
  0x23   :  { %v351_v60 = vcombine.high %v2412_v50, %v2412_v50  ;;  %v2428_v34 = vrot.slane %v336_v52, %v2352_v44  ;;  %v130_v61 = vcombine.low %v74_v38, %v78_v40  ;;  %v238_v21 = vrot.slane %v2401_v29, %v2363_v51  ;;  %v2124_v46 = vld [vmem:[%s2771_s3 + $0x1a8] sm:$0xff]   ;;  %v2129_v38 = vld [vmem:[%s2771_s3 + $0x158] sm:$0xff]  }
  0x24   :  { %1482 = vmatprep.mubr.bf16.mxu0 %v404_v54  ;;  %1522 = vmatprep.mubr.bf16.mxu1 %v406_v62  ;;  %v290_v23 = vcombine.low %v226_v10, %v230_v14  ;;  %v25_v25 = vunpack.c.l.bf16 %v22_v39  ;;  %v162_v26 = vcombine.low %v154_v17, %v161_v45  ;;  %v281_v28 = vrot.slane %v273_v8, %v2352_v44  ;;  %v2131_v52 = vld [vmem:[%s2771_s3 + $0x118] sm:$0xff]   ;;  %v2154_v17 = vld [vmem:[%s2771_s3 + $0x2e8] sm:$0xff]  }
  0x25   :  { %1483 = vmatmul.mubr.bf16.vlgmr.msra.gmra.mxu0 %v403_v49  ;;  %v408_v3 = vpack.c.bf16 %v351_v60, %v351_v60  ;;  %v352_v4 = vcombine.high %v2428_v34, %v2428_v34  ;;  %1523 = vmatmul.mubr.bf16.vlgmr.msra.gmra.mxu1 %v405_v32  ;;  %v144_v16 = vrot.slane %v130_v61, %v2352_v44  ;;  %v2137_v60 = vld [vmem:[%s2771_s3 + $0x148] sm:$0xff]   ;;  %v2136_v61 = vld [vmem:[%s2771_s3 + $0x190] sm:$0xff]   ;;  %v2145_v39 = vld [vmem:[%s2771_s3 + $0x278] sm:$0xff]  }
  0x26   :  { %1949 = vmatpush3.bf16.msra.mxu0 %v2115_v56  ;;  %1971 = vmatpush3.bf16.msra.mxu1 %v2116_v37  ;;  %v291_v27 = vcombine.low %v234_v20, %v238_v21  ;;  %v288_v29 = vrot.slane %v274_v41, %v2352_v44  ;;  %v298_v30 = vrot.slane %v290_v23, %v2352_v44  ;;  %v2132_v56 = vld [vmem:[%s2771_s3 + $0x198] sm:$0xff]   ;;  %v2138_v37 = vld [vmem:[%s2771_s3 + $0x1c8] sm:$0xff]   ;;  %v2152_v41 = vld [vmem:[%s2771_s3 + $0x2b0] sm:$0xff]  }
  0x27   :  { %1950 = vmatprep.subr.bf16.mxu0 %v2117_v59  ;;  %v410_v12 = vpack.c.bf16 %v352_v4, %v352_v4  ;;  %1562 = vmatprep.mubr.bf16.mxu0 %v408_v3  ;;  %v145_v51 = vcombine.low %v137_v5, %v144_v16  ;;  %v170_v33 = vmul.f32 %v162_v26, %v26_v19  ;;  %v2135_v59 = vld [vmem:[%s2771_s3 + $0x110] sm:$0xff]   ;;  %v2142_v4 = vld [vmem:[%s2771_s3 + $0x1c0] sm:$0xff]   ;;  %v2147_v10 = vld [vmem:[%s2771_s3 + $0x238] sm:$0xff]  }
  0x28   :  { %1972 = vmatprep.subr.bf16.mxu1 %v2118_v2  ;;  %v305_v35 = vrot.slane %v291_v27, %v2352_v44  ;;  %v289_v47 = vcombine.low %v281_v28, %v288_v29  ;;  %v2140_v2 = vld [vmem:[%s2771_s3 + $0x188] sm:$0xff]   ;;  %v2143_v5 = vld [vmem:[%s2771_s3 + $0x100] sm:$0xff]   ;;  %v407_v8 = vpack.c.bf16 %v2412_v50, %v2412_v50  ;;  %v2148_v50 = vld [vmem:[%s2771_s3 + $0x2b8] sm:$0xff]  }
  0x29   :  { %1602 = vmatprep.mubr.bf16.mxu1 %v410_v12  ;;  %v169_v43 = vmul.f32 %v145_v51, %v25_v25  ;;  %v409_v12 = vpack.c.bf16 %v2428_v34, %v2428_v34  ;;  %v2151_v34 = vld [vmem:[%s2771_s3 + $0x230] sm:$0xff]   ;;  %v2153_v16 = vld [vmem:[%s2771_s3 + $0x268] sm:$0xff]   ;;  %v2157_v19 = vld [vmem:[%s2771_s3 + $0x260] sm:$0xff]  }
  0x2a   :  { %1951 = vmatpush3.bf16.msra.mxu0 %v2119_v7  ;;  %1973 = vmatpush3.bf16.msra.mxu1 %v2120_v15  ;;  %v306_v40 = vcombine.low %v298_v30, %v305_v35  ;;  %v2150_v15 = vld [vmem:[%s2771_s3 + $0x2f0] sm:$0xff]   ;;  %v2156_v45 = vld [vmem:[%s2771_s3 + $0x2a8] sm:$0xff]   ;;  %v2158_v20 = vld [vmem:[%s2771_s3 + $0x2e0] sm:$0xff]  }
  0x2b   :  { %1952 = vmatprep.subr.bf16.mxu0 %v2121_v11  ;;  %1974 = vmatprep.subr.bf16.mxu1 %v2122_v18  ;;  %v313_v57 = vadd.f32 %v289_v47, %v169_v43  ;;  %v2155_v18 = vld [vmem:[%s2771_s3 + $0x228] sm:$0xff]   ;;  %v2159_v21 = vld [vmem:[%s2771_s3 + $0x220] sm:$0xff]   ;;  %v2163_v25 = vld [vmem:[%s2771_s3 + $0x218] sm:$0xff]  }
  0x2c   :  { %v314_v49 = vadd.f32 %v306_v40, %v170_v33  ;;  %v2160_v23 = vld [vmem:[%s2771_s3 + $0x2a0] sm:$0xff]   ;;  %v2165_v26 = vld [vmem:[%s2771_s3 + $0x250] sm:$0xff]   ;;  %v2164_v27 = vld [vmem:[%s2771_s3 + $0x298] sm:$0xff]  }
  0x2d   :  { %v353_v62 = vcombine.high %v313_v57, %v313_v57  ;;  %v2533_v0 = vrot.slane %v313_v57, %v2352_v44  ;;  %v2167_v51 = vld [vmem:[%s2771_s3 + $0x210] sm:$0xff]   ;;  %v2169_v28 = vld [vmem:[%s2771_s3 + $0x248] sm:$0xff]   ;;  %v2173_v33 = vld [vmem:[%s2771_s3 + $0x240] sm:$0xff]  }
  0x2e   :  { %1953 = vmatpush3.bf16.msra.mxu0 %v2123_v22  ;;  %1975 = vmatpush3.bf16.msra.mxu1 %v2124_v46  ;;  %v2506_v54 = vrot.slane %v314_v49, %v2352_v44  ;;  %v370_v55 = vcombine.high %v314_v49, %v314_v49  ;;  %v2161_v22 = vld [vmem:[%s2771_s3 + $0x258] sm:$0xff]   ;;  %v2166_v46 = vld [vmem:[%s2771_s3 + $0x2d0] sm:$0xff]   ;;  %v2170_v30 = vld [vmem:[%s2771_s3 + $0x2c8] sm:$0xff]  }
  0x2f   :  { %1954 = vmatprep.subr.bf16.mxu0 %v2125_v24  ;;  %1976 = vmatprep.subr.bf16.mxu1 %v2126_v31  ;;  %v2542_v3 = vrot.slane %v353_v62, %v2352_v44  ;;  %v368_v6 = vcombine.high %v2533_v0, %v2533_v0  ;;  %v2162_v24 = vld [vmem:[%s2771_s3 + $0x2d8] sm:$0xff]   ;;  %v2168_v29 = vld [vmem:[%s2771_s3 + $0x290] sm:$0xff]   ;;  %v2171_v31 = vld [vmem:[%s2771_s3 + $0x208] sm:$0xff]  }
  0x30   :  { %v2515_v32 = vrot.slane %v370_v55, %v2352_v44  ;;  %v2144_v44 = vld [vmem:[%s2771_s3 + $0x180] sm:$0xff]   ;;  %v2172_v35 = vld [vmem:[%s2771_s3 + $0x288] sm:$0xff]   ;;  %v385_v40 = vcombine.high %v2506_v54, %v2506_v54  ;;  %v2178_v49 = vld [vmem:[%s2771_s3 + $0x3f8] sm:$0xff]  }
  0x31   :  { %v369_v7 = vcombine.high %v2542_v3, %v2542_v3  ;;  %v412_v11 = vpack.c.bf16 %v368_v6, %v368_v6  ;;  %v2176_v43 = vld [vmem:[%s2771_s3 + $0x280] sm:$0xff]   ;;  %v413_v55 = vpack.c.bf16 %v2542_v3, %v2542_v3  ;;  %v2180_v57 = vld [vmem:[%s2771_s3 + $0x3b8] sm:$0xff]   ;;  %v2184_v62 = vld [vmem:[%s2771_s3 + $0x3b0] sm:$0xff]  }
  0x32   :  { %1955 = vmatpush3.bf16.msra.mxu0 %v2127_v36  ;;  %1977 = vmatpush3.bf16.msra.mxu1 %v2128_v42  ;;  %v2174_v36 = vld [vmem:[%s2771_s3 + $0x2c0] sm:$0xff]   ;;  %v2177_v42 = vld [vmem:[%s2771_s3 + $0x378] sm:$0xff]   ;;  %v386_v47 = vcombine.high %v2515_v32, %v2515_v32 }
  0x33   :  { %1956 = vmatprep.subr.bf16.mxu0 %v2129_v38  ;;  %1978 = vmatprep.subr.bf16.mxu1 %v2130_v48  ;;  %v414_v14 = vpack.c.bf16 %v369_v7, %v369_v7  ;;  %v2175_v38 = vld [vmem:[%s2771_s3 + $0x200] sm:$0xff]   ;;  %v411_v48 = vpack.c.bf16 %v2533_v0, %v2533_v0  ;;  %v2194_v6 = vld [vmem:[%s2771_s3 + $0x3d8] sm:$0xff]  }
  0x34   :  { %v2189_v0 = vld [vmem:[%s2771_s3 + $0x360] sm:$0xff]   ;;  %v2196_v7 = vld [vmem:[%s2771_s3 + $0x398] sm:$0xff]  }
  0x35   :  { %v2191_v3 = vld [vmem:[%s2771_s3 + $0x320] sm:$0xff]  }
  0x36   :  { %1957 = vmatpush3.bf16.msra.mxu0 %v2131_v52  ;;  %1979 = vmatpush3.bf16.msra.mxu1 %v2132_v56  ;;  %v2179_v52 = vld [vmem:[%s2771_s3 + $0x338] sm:$0xff]   ;;  %v2181_v56 = vld [vmem:[%s2771_s3 + $0x370] sm:$0xff]  }
  0x37   :  { %1958 = vmatprep.subr.bf16.mxu0 %v2133_v53  ;;  %1980 = vmatprep.subr.bf16.mxu1 %v2134_v58  ;;  %v416_v53 = vpack.c.bf16 %v385_v40, %v385_v40  ;;  %v418_v58 = vpack.c.bf16 %v386_v47, %v386_v47 }
  0x3a   :  { %1959 = vmatpush3.bf16.msra.mxu0 %v2135_v59  ;;  %1981 = vmatpush3.bf16.msra.mxu1 %v2136_v61  ;;  %v2182_v59 = vld [vmem:[%s2771_s3 + $0x3f0] sm:$0xff]   ;;  %v2185_v61 = vld [vmem:[%s2771_s3 + $0x368] sm:$0xff]  }
  0x3b   :  { %1960 = vmatprep.subr.bf16.mxu0 %v2137_v60  ;;  %1982 = vmatprep.subr.bf16.mxu1 %v2138_v37  ;;  %v2183_v60 = vld [vmem:[%s2771_s3 + $0x330] sm:$0xff]   ;;  %v2186_v37 = vld [vmem:[%s2771_s3 + $0x3e8] sm:$0xff]  }
  0x3e   :  { %1961 = vmatpush3.bf16.msra.mxu0 %v2139_v63  ;;  %1983 = vmatpush3.bf16.msra.mxu1 %v2140_v2  ;;  %v2187_v63 = vld [vmem:[%s2771_s3 + $0x328] sm:$0xff]   ;;  %v2190_v2 = vld [vmem:[%s2771_s3 + $0x3e0] sm:$0xff]  }
  0x3f   :  { %1962 = vmatprep.subr.bf16.mxu0 %v2141_v1  ;;  %1984 = vmatprep.subr.bf16.mxu1 %v2142_v4  ;;  %v2188_v1 = vld [vmem:[%s2771_s3 + $0x3a8] sm:$0xff]   ;;  %v2193_v4 = vld [vmem:[%s2771_s3 + $0x358] sm:$0xff]  }
  0x42   :  { %1963 = vmatpush3.bf16.msra.mxu0 %v2143_v5  ;;  %1985 = vmatpush3.bf16.msra.mxu1 %v2144_v44  ;;  %v2192_v5 = vld [vmem:[%s2771_s3 + $0x3a0] sm:$0xff]   ;;  %v2197_v44 = vld [vmem:[%s2771_s3 + $0x350] sm:$0xff]  }
  0x43   :  { %1992 = vmatprep.subr.bf16.mxu0 %v2145_v39  ;;  %2014 = vmatprep.subr.bf16.mxu1 %v2146_v9  ;;  %v2195_v39 = vld [vmem:[%s2771_s3 + $0x318] sm:$0xff]   ;;  %v2199_v9 = vld [vmem:[%s2771_s3 + $0x310] sm:$0xff]  }
  0x45   :  { %1563 = vmatmul.mubr.bf16.vlgmr.msra.gmra.mxu0 %v407_v8  ;;  %1603 = vmatmul.mubr.bf16.vlgmr.msra.gmra.mxu1 %v409_v12  ;;  %v2198_v8 = vld [vmem:[%s2771_s3 + $0x3d0] sm:$0xff]   ;;  %v2202_v12 = vld [vmem:[%s2771_s3 + $0x3c8] sm:$0xff]  }
  0x46   :  { %1993 = vmatpush3.bf16.msra.mxu0 %v2147_v10  ;;  %1642 = vmatprep.mubr.bf16.mxu0 %v412_v11  ;;  %v2201_v10 = vld [vmem:[%s2771_s3 + $0x348] sm:$0xff]   ;;  %v2200_v11 = vld [vmem:[%s2771_s3 + $0x390] sm:$0xff]  }
  0x47   :  { %1994 = vmatprep.subr.bf16.mxu0 %v2149_v13  ;;  %2015 = vmatpush3.bf16.msra.mxu1 %v2148_v50  ;;  %v2203_v13 = vld [vmem:[%s2771_s3 + $0x308] sm:$0xff]   ;;  %v2205_v50 = vld [vmem:[%s2771_s3 + $0x340] sm:$0xff]  }
  0x48   :  { %1682 = vmatprep.mubr.bf16.mxu1 %v414_v14  ;;  %2016 = vmatprep.subr.bf16.mxu1 %v2150_v15  ;;  %v2204_v14 = vld [vmem:[%s2771_s3 + $0x388] sm:$0xff]   ;;  %v2206_v15 = vld [vmem:[%s2771_s3 + $0x3c0] sm:$0xff]  }
  0x4a   :  { %1995 = vmatpush3.bf16.msra.mxu0 %v2151_v34  ;;  %v2207_v34 = vld [vmem:[%s2771_s3 + $0x300] sm:$0xff]  }
  0x4b   :  { %1996 = vmatprep.subr.bf16.mxu0 %v2153_v16  ;;  %2017 = vmatpush3.bf16.msra.mxu1 %v2152_v41  ;;  %v2208_v16 = vld [vmem:[%s2771_s3 + $0x380] sm:$0xff]   ;;  %v415_v41 = vpack.c.bf16 %v2506_v54, %v2506_v54 }
  0x4c   :  { %2018 = vmatprep.subr.bf16.mxu1 %v2154_v17  ;;  %v417_v17 = vpack.c.bf16 %v2515_v32, %v2515_v32 }
  0x4e   :  { %1997 = vmatpush3.bf16.msra.mxu0 %v2155_v18 }
  0x4f   :  { %1998 = vmatprep.subr.bf16.mxu0 %v2157_v19  ;;  %2019 = vmatpush3.bf16.msra.mxu1 %v2156_v45  ;;  %v1775_v45 = vld [vmem:[%s2775_s4] ss:$0 sm:$0xff] }
  0x50   :  { %2020 = vmatprep.subr.bf16.mxu1 %v2158_v20 }
  0x52   :  { %1999 = vmatpush3.bf16.msra.mxu0 %v2159_v21 }
  0x53   :  { %2000 = vmatprep.subr.bf16.mxu0 %v2161_v22  ;;  %2021 = vmatpush3.bf16.msra.mxu1 %v2160_v23 }
  0x54   :  { %2022 = vmatprep.subr.bf16.mxu1 %v2162_v24 }
  0x56   :  { %2001 = vmatpush3.bf16.msra.mxu0 %v2163_v25 }
  0x57   :  { %2002 = vmatprep.subr.bf16.mxu0 %v2165_v26  ;;  %2023 = vmatpush3.bf16.msra.mxu1 %v2164_v27 }
  0x58   :  { %2024 = vmatprep.subr.bf16.mxu1 %v2166_v46 }
  0x5a   :  { %2003 = vmatpush3.bf16.msra.mxu0 %v2167_v51 }
  0x5b   :  { %2004 = vmatprep.subr.bf16.mxu0 %v2169_v28  ;;  %2025 = vmatpush3.bf16.msra.mxu1 %v2168_v29 }
  0x5c   :  { %2026 = vmatprep.subr.bf16.mxu1 %v2170_v30 }
  0x5e   :  { %2005 = vmatpush3.bf16.msra.mxu0 %v2171_v31 }
  0x5f   :  { %2006 = vmatprep.subr.bf16.mxu0 %v2173_v33  ;;  %2027 = vmatpush3.bf16.msra.mxu1 %v2172_v35 }
  0x60   :  { %2028 = vmatprep.subr.bf16.mxu1 %v2174_v36 }
  0x62   :  { %2007 = vmatpush3.bf16.msra.mxu0 %v2175_v38 }
  0x63   :  { %2036 = vmatprep.subr.bf16.mxu0 %v2177_v42  ;;  %2029 = vmatpush3.bf16.msra.mxu1 %v2176_v43 }
  0x64   :  { %2058 = vmatprep.subr.bf16.mxu1 %v2178_v49 }
  0x65   :  { %1643 = vmatmul.mubr.bf16.vlgmr.msra.gmra.mxu0 %v411_v48 }
  0x66   :  { %2037 = vmatpush3.bf16.msra.mxu0 %v2179_v52  ;;  %1722 = vmatprep.mubr.bf16.mxu0 %v416_v53 }
  0x67   :  { %1683 = vmatmul.mubr.bf16.vlgmr.msra.gmra.mxu1 %v413_v55  ;;  %2038 = vmatprep.subr.bf16.mxu0 %v2181_v56 }
  0x68   :  { %2059 = vmatpush3.bf16.msra.mxu1 %v2180_v57  ;;  %1762 = vmatprep.mubr.bf16.mxu1 %v418_v58 }
  0x69   :  { %2060 = vmatprep.subr.bf16.mxu1 %v2182_v59 }
  0x6a   :  { %2039 = vmatpush3.bf16.msra.mxu0 %v2183_v60 }
  0x6b   :  { %2040 = vmatprep.subr.bf16.mxu0 %v2185_v61 }
  0x6c   :  { %2061 = vmatpush3.bf16.msra.mxu1 %v2184_v62 }
  0x6d   :  { %2062 = vmatprep.subr.bf16.mxu1 %v2186_v37 }
  0x6e   :  { %2041 = vmatpush3.bf16.msra.mxu0 %v2187_v63 }
  0x6f   :  { %2042 = vmatprep.subr.bf16.mxu0 %v2189_v0 }
  0x70   :  { %2063 = vmatpush3.bf16.msra.mxu1 %v2188_v1 }
  0x71   :  { %2064 = vmatprep.subr.bf16.mxu1 %v2190_v2 }
  0x72   :  { %2043 = vmatpush3.bf16.msra.mxu0 %v2191_v3 }
  0x73   :  { %2044 = vmatprep.subr.bf16.mxu0 %v2193_v4 }
  0x74   :  { %2065 = vmatpush3.bf16.msra.mxu1 %v2192_v5 }
  0x75   :  { %2066 = vmatprep.subr.bf16.mxu1 %v2194_v6 }
  0x76   :  { %2045 = vmatpush3.bf16.msra.mxu0 %v2195_v39 }
  0x77   :  { %2046 = vmatprep.subr.bf16.mxu0 %v2197_v44 }
  0x78   :  { %2067 = vmatpush3.bf16.msra.mxu1 %v2196_v7 }
  0x79   :  { %2068 = vmatprep.subr.bf16.mxu1 %v2198_v8 }
  0x7a   :  { %2047 = vmatpush3.bf16.msra.mxu0 %v2199_v9 }
  0x7b   :  { %2048 = vmatprep.subr.bf16.mxu0 %v2201_v10 }
  0x7c   :  { %2069 = vmatpush3.bf16.msra.mxu1 %v2200_v11 }
  0x7d   :  { %2070 = vmatprep.subr.bf16.mxu1 %v2202_v12 }
  0x7e   :  { %2049 = vmatpush3.bf16.msra.mxu0 %v2203_v13 }
  0x7f   :  { %2050 = vmatprep.subr.bf16.mxu0 %v2205_v50 }
  0x80   :  { %2071 = vmatpush3.bf16.msra.mxu1 %v2204_v14 }
  0x81   :  { %2072 = vmatprep.subr.bf16.mxu1 %v2206_v15 }
  0x82   :  { %2051 = vmatpush3.bf16.msra.mxu0 %v2207_v34 }
  0x84   :  { %2073 = vmatpush3.bf16.msra.mxu1 %v2208_v16 }
  0x85   :  { %1723 = vmatmul.mubr.bf16.vlgmr.msra.gmra.mxu0 %v415_v41 }
  0x87   :  { %1763 = vmatmul.mubr.bf16.vlgmr.msra.gmra.mxu1 %v417_v17 }
  0xe5   :  { %v1920_v18 = vpop.f32.mrf.mxu0  ;;  %v1942_v19 = vpop.f32.mrf.mxu1 }
  0xe7   :  { %v1921_v20 = vpop.f32.mrf.mxu0  ;;  %v1943_v22 = vpop.f32.mrf.mxu1 }
  0xe8   :  { %v1922_v21 = vadd.f32 %v1921_v20, %v1920_v18  ;;  %v1944_v25 = vadd.f32 %v1943_v22, %v1942_v19 }
  0xe9   :  { %v1923_v23 = vpop.f32.mrf.mxu0  ;;  %v1945_v54 = vpop.f32.mrf.mxu1 }
  0xea   :  { %v1485_v24 = vadd.f32 %v1922_v21, %v1775_v45 }
  0xeb   :  { %v1924_v26 = vpop.f32.mrf.mxu0  ;;  %v1946_v46 = vpop.f32.mrf.mxu1 }
  0xec   :  { %v1525_v27 = vadd.f32 %v1944_v25, %v1485_v24 }
 0x105   :  { %v1964_v32 = vpop.f32.mrf.mxu0  ;;  %v1986_v51 = vpop.f32.mrf.mxu1 }
 0x107   :  { %v1965_v28 = vpop.f32.mrf.mxu0  ;;  %v1987_v29 = vpop.f32.mrf.mxu1 }
 0x108   :  { %v1966_v52 = vadd.f32 %v1965_v28, %v1964_v32  ;;  %v1988_v55 = vadd.f32 %v1987_v29, %v1986_v51 }
 0x109   :  { %v1967_v30 = vpop.f32.mrf.mxu0  ;;  %v1989_v31 = vpop.f32.mrf.mxu1 }
 0x10a   :  { %v1565_v53 = vadd.f32 %v1966_v52, %v1525_v27 }
 0x10b   :  { %v1968_v33 = vpop.f32.mrf.mxu0  ;;  %v1990_v35 = vpop.f32.mrf.mxu1 }
 0x10c   :  { %v1605_v57 = vadd.f32 %v1988_v55, %v1565_v53 }
 0x125   :  { %v2008_v36 = vpop.f32.mrf.mxu0 }
 0x127   :  { %v2030_v38 = vpop.f32.mrf.mxu1  ;;  %v2009_v40 = vpop.f32.mrf.mxu0 }
 0x128   :  { %v2010_v56 = vadd.f32 %v2009_v40, %v2008_v36 }
 0x129   :  { %v2031_v42 = vpop.f32.mrf.mxu1  ;;  %v2011_v43 = vpop.f32.mrf.mxu0 }
 0x12a   :  { %v1645_v58 = vadd.f32 %v2010_v56, %v1605_v57  ;;  %v2032_v59 = vadd.f32 %v2031_v42, %v2030_v38 }
 0x12b   :  { %v2033_v47 = vpop.f32.mrf.mxu1  ;;  %v2012_v48 = vpop.f32.mrf.mxu0 }
 0x12c   :  { %v1685_v37 = vadd.f32 %v2032_v59, %v1645_v58 }
 0x12d   :  { %v2034_v49 = vpop.f32.mrf.mxu1 }
 0x145   :  { %v2052_v60 = vpop.f32.mrf.mxu0 }
 0x147   :  { %v2074_v61 = vpop.f32.mrf.mxu1  ;;  %v2053_v62 = vpop.f32.mrf.mxu0 }
 0x148   :  { %v2054_v63 = vadd.f32 %v2053_v62, %v2052_v60 }
 0x149   :  { %v2075_v0 = vpop.f32.mrf.mxu1  ;;  %v2055_v1 = vpop.f32.mrf.mxu0 }
 0x14a   :  { %v1725_v2 = vadd.f32 %v2054_v63, %v1685_v37  ;;  %v2076_v3 = vadd.f32 %v2075_v0, %v2074_v61 }
 0x14b   :  { %v2077_v4 = vpop.f32.mrf.mxu1  ;;  %v2056_v5 = vpop.f32.mrf.mxu0 }
 0x14c   :  { %v1765_v6 = vadd.f32 %v2076_v3, %v1725_v2 }
 0x14d   :  { %v2078_v39 = vpop.f32.mrf.mxu1 }
 0x14e   :  { %1770 = vst [vmem:[%s2776_s5] sm:$0x3] %v1765_v6 }

</bundles_post_ra>
